<compile_context>
chip_gen: v5e
topology: v5e:2x2
jax: 0.10.0
libtpu: 0.0.40
codegen_flags: <defaults>
</compile_context>

<pallas_src>
import functools

import jax
import jax.numpy as jnp
from jax.experimental import pallas as pl
from jax.experimental.pallas import tpu as pltpu


LN_EPS = 1e-5  # PyTorch nn.LayerNorm default


def _layernorm(v, w, b):
    mu = jnp.mean(v, axis=-1, keepdims=True)
    var = jnp.mean((v - mu) ** 2, axis=-1, keepdims=True)
    return (v - mu) * jax.lax.rsqrt(var + LN_EPS) * w + b


# ---------------------------------------------------------------------------
# Fused kernel: grid = (B, depth);  depth axis is "arbitrary" (sequential),
# batch axis is "parallel".  act_ref (VMEM scratch) carries the residual stream.
# ---------------------------------------------------------------------------
def _decoder_kernel(x_ref,
                    ln1w_ref, ln1b_ref,
                    wq_ref, wk_ref, wv_ref, bq_ref, bk_ref, bv_ref,
                    wo_ref, bo_ref,
                    ln2w_ref, ln2b_ref,
                    w1_ref, b1_ref, w2_ref, b2_ref,
                    normw_ref, normb_ref, wh_ref, bh_ref,
                    o_ref,
                    act_ref,
                    *, num_heads):
    d = pl.program_id(1)
    n_layers = pl.num_programs(1)
    H = num_heads

    @pl.when(d == 0)
    def _():
        act_ref[...] = x_ref[0]                      # load residual stream for this batch elem

    x = act_ref[...]                                 # (N, D) f32 residual stream
    N, D = x.shape

    # ---- attention branch (heads batched on a leading axis; no per-head loop) ----
    xn = _layernorm(x, ln1w_ref[0, 0], ln1b_ref[0, 0]).astype(jnp.bfloat16)
    xb = jnp.broadcast_to(xn[None], (H, N, D))       # (H, N, D) bf16, cheap leading-dim bcast

    q = jnp.einsum("hnd,hde->hne", xb, wq_ref[0],
                   preferred_element_type=jnp.float32) + bq_ref[0]     # (H, N, dh)
    k = jnp.einsum("hnd,hde->hne", xb, wk_ref[0],
                   preferred_element_type=jnp.float32) + bk_ref[0]
    v = jnp.einsum("hnd,hde->hne", xb, wv_ref[0],
                   preferred_element_type=jnp.float32) + bv_ref[0]

    # 1/sqrt(dim_head) is pre-folded into wq / bq at parameter-prep time.
    s = jnp.einsum("hqe,hke->hqk", q.astype(jnp.bfloat16), k.astype(jnp.bfloat16),
                   preferred_element_type=jnp.float32)                 # (H, N, N)
    s = s - jnp.max(s, axis=-1, keepdims=True)
    p = jnp.exp(s)
    p = p * pl.reciprocal(jnp.sum(p, axis=-1, keepdims=True), approx=True)

    oh = jnp.einsum("hqk,hke->hqe", p.astype(jnp.bfloat16), v.astype(jnp.bfloat16),
                    preferred_element_type=jnp.float32)                # (H, N, dh)
    # output projection per head (wo rows pre-split per head) then reduce over heads
    attn = jnp.einsum("hqe,hed->hqd", oh.astype(jnp.bfloat16), wo_ref[0],
                      preferred_element_type=jnp.float32)              # (H, N, D)
    attn = jnp.sum(attn, axis=0) + bo_ref[0, 0]                        # (N, D)
    x = x + attn                                                       # residual 1

    # ---- MLP branch ----
    xn2 = _layernorm(x, ln2w_ref[0, 0], ln2b_ref[0, 0]).astype(jnp.bfloat16)
    h1 = jnp.dot(xn2, w1_ref[0], preferred_element_type=jnp.float32) + b1_ref[0, 0]
    # TODO(synk): TransformerBlock source not given; assuming tanh-approx GELU.
    h1 = jax.nn.gelu(h1, approximate=True)
    h2 = jnp.dot(h1.astype(jnp.bfloat16), w2_ref[0],
                 preferred_element_type=jnp.float32) + b2_ref[0, 0]
    x = x + h2                                                         # residual 2

    act_ref[...] = x

    # ---- final LayerNorm + Linear head, only on the last layer step ----
    @pl.when(d == n_layers - 1)
    def _():
        xo = _layernorm(x, normw_ref[0], normb_ref[0]).astype(jnp.bfloat16)
        o_ref[0] = (jnp.dot(xo, wh_ref[...], preferred_element_type=jnp.float32)
                    + bh_ref[0])


# ---------------------------------------------------------------------------
# Wrapper building the single pallas_call
# ---------------------------------------------------------------------------
def pretrain_vit_decoder_forward(x, params, *, num_heads):
    B, N, D = x.shape
    stk = params["stacked"]
    depth = stk["ln1_w"].shape[0]
    out_dim = params["w_head"].shape[-1]

    def layer_spec(shape):
        nd = len(shape)
        return pl.BlockSpec((1,) + tuple(shape[1:]),
                            lambda b, d, _nd=nd: (d,) + (0,) * (_nd - 1))

    def const_spec(shape):
        nd = len(shape)
        # NOTE: index constant across the whole grid -> fetched once.  (On v7x,
        # pipeline_mode=pl.Buffered(1) could also halve their VMEM, but they are tiny.)
        return pl.BlockSpec(tuple(shape), lambda b, d, _nd=nd: (0,) * _nd)

    in_specs = [
        pl.BlockSpec((1, N, D), lambda b, d: (b, 0, 0)),   # x (dedup'd across depth)
        layer_spec(stk["ln1_w"].shape), layer_spec(stk["ln1_b"].shape),
        layer_spec(stk["wq"].shape), layer_spec(stk["wk"].shape), layer_spec(stk["wv"].shape),
        layer_spec(stk["bq"].shape), layer_spec(stk["bk"].shape), layer_spec(stk["bv"].shape),
        layer_spec(stk["wo"].shape), layer_spec(stk["bo"].shape),
        layer_spec(stk["ln2_w"].shape), layer_spec(stk["ln2_b"].shape),
        layer_spec(stk["w1"].shape), layer_spec(stk["b1"].shape),
        layer_spec(stk["w2"].shape), layer_spec(stk["b2"].shape),
        const_spec(params["norm_w"].shape), const_spec(params["norm_b"].shape),
        const_spec(params["w_head"].shape), const_spec(params["b_head"].shape),
    ]
    out_spec = pl.BlockSpec((1, N, out_dim), lambda b, d: (b, 0, 0))

    kernel = functools.partial(_decoder_kernel, num_heads=num_heads)
    return pl.pallas_call(
        kernel,
        out_shape=jax.ShapeDtypeStruct((B, N, out_dim), jnp.float32),
        grid=(B, depth),
        in_specs=in_specs,
        out_specs=out_spec,
        scratch_shapes=[pltpu.VMEM((N, D), jnp.float32)],   # resident residual stream
        compiler_params=pltpu.CompilerParams(
            dimension_semantics=("parallel", "arbitrary"),
            vmem_limit_bytes=64 * 1024 * 1024,              # fits v7x physical VMEM
        ),
    )(x,
      stk["ln1_w"], stk["ln1_b"],
      stk["wq"], stk["wk"], stk["wv"],
      stk["bq"], stk["bk"], stk["bv"],
      stk["wo"], stk["bo"],
      stk["ln2_w"], stk["ln2_b"],
      stk["w1"], stk["b1"], stk["w2"], stk["b2"],
      params["norm_w"], params["norm_b"], params["w_head"], params["b_head"])


# ---------------------------------------------------------------------------
# Deterministic parameter construction
# (xavier_uniform_ for Linear, LN weight=1 / bias=0, Linear biases=0 — as in the module)
# Matmul weights stored bf16; biases / LN params kept f32.
# ---------------------------------------------------------------------------
def _xavier_uniform(key, fan_in, fan_out):
    limit = (6.0 / (fan_in + fan_out)) ** 0.5
    return jax.random.uniform(key, (fan_in, fan_out), jnp.float32, -limit, limit)


def init_params(key, *, embed_dim, depth, num_heads, mlp_ratio, out_dim):
    D = embed_dim
    H = num_heads
    dh = D // H
    Hm = int(D * mlp_ratio)
    scale = 1.0 / (float(dh) ** 0.5)

    def per_head(w):                     # (D, D) -> (H, D, dh)
        return jnp.transpose(w.reshape(D, H, dh), (1, 0, 2))

    keys = jax.random.split(key, depth * 4 + 1)
    names = ("ln1_w", "ln1_b", "wq", "wk", "wv", "bq", "bk", "bv",
             "wo", "bo", "ln2_w", "ln2_b", "w1", "b1", "w2", "b2")
    per = {n: [] for n in names}
    for l in range(depth):
        kq, ko, k1, k2 = keys[4 * l: 4 * l + 4]
        wqkv = _xavier_uniform(kq, D, 3 * D)
        per["ln1_w"].append(jnp.ones((1, D), jnp.float32))
        per["ln1_b"].append(jnp.zeros((1, D), jnp.float32))
        per["wq"].append(per_head(wqkv[:, :D] * scale).astype(jnp.bfloat16))  # scale folded in
        per["wk"].append(per_head(wqkv[:, D:2 * D]).astype(jnp.bfloat16))
        per["wv"].append(per_head(wqkv[:, 2 * D:]).astype(jnp.bfloat16))
        per["bq"].append(jnp.zeros((H, 1, dh), jnp.float32))
        per["bk"].append(jnp.zeros((H, 1, dh), jnp.float32))
        per["bv"].append(jnp.zeros((H, 1, dh), jnp.float32))
        per["wo"].append(_xavier_uniform(ko, D, D).reshape(H, dh, D).astype(jnp.bfloat16))
        per["bo"].append(jnp.zeros((1, D), jnp.float32))
        per["ln2_w"].append(jnp.ones((1, D), jnp.float32))
        per["ln2_b"].append(jnp.zeros((1, D), jnp.float32))
        per["w1"].append(_xavier_uniform(k1, D, Hm).astype(jnp.bfloat16))
        per["b1"].append(jnp.zeros((1, Hm), jnp.float32))
        per["w2"].append(_xavier_uniform(k2, Hm, D).astype(jnp.bfloat16))
        per["b2"].append(jnp.zeros((1, D), jnp.float32))

    stacked = {n: jnp.stack(v, axis=0) for n, v in per.items()}
    return {
        "stacked": stacked,
        "norm_w": jnp.ones((1, D), jnp.float32),
        "norm_b": jnp.zeros((1, D), jnp.float32),
        "w_head": _xavier_uniform(keys[-1], D, out_dim).astype(jnp.bfloat16),
        "b_head": jnp.zeros((1, out_dim), jnp.float32),
    }


if __name__ == "__main__":
    # Small, lane-friendly shapes consistent with the module's [B, N, embed_dim] forward.
    B, N = 2, 8
    embed_dim = 128        # multiple of 128 -> lane-dense tiles
    num_heads = 4          # dim_head = 32
    depth = 2
    mlp_ratio = 4.0
    out_dim = 128          # lane-dense head output for the demo

    key = jax.random.PRNGKey(0)
    kx, kp = jax.random.split(key)
    x = jax.random.normal(kx, (B, N, embed_dim), jnp.float32)
    params = init_params(kp, embed_dim=embed_dim, depth=depth, num_heads=num_heads,
                         mlp_ratio=mlp_ratio, out_dim=out_dim)

    out = pretrain_vit_decoder_forward(x, params, num_heads=num_heads)
    out = jax.block_until_ready(out)
    assert out.shape == (B, N, out_dim)
    assert bool(jnp.all(jnp.isfinite(out)))
    print("KERNEL_OK")
</pallas_src>

<mosaic_0001>
module attributes {stable_mosaic.version = 11 : i64} {
  func.func @_decoder_kernel(%arg0: i32, %arg1: i32, %arg2: memref<1x8x128xf32, #tpu.memory_space<vmem>>, %arg3: memref<1x1x128xf32, #tpu.memory_space<vmem>>, %arg4: memref<1x1x128xf32, #tpu.memory_space<vmem>>, %arg5: memref<1x4x128x32xbf16, #tpu.memory_space<vmem>>, %arg6: memref<1x4x128x32xbf16, #tpu.memory_space<vmem>>, %arg7: memref<1x4x128x32xbf16, #tpu.memory_space<vmem>>, %arg8: memref<1x4x1x32xf32, #tpu.memory_space<vmem>>, %arg9: memref<1x4x1x32xf32, #tpu.memory_space<vmem>>, %arg10: memref<1x4x1x32xf32, #tpu.memory_space<vmem>>, %arg11: memref<1x4x32x128xbf16, #tpu.memory_space<vmem>>, %arg12: memref<1x1x128xf32, #tpu.memory_space<vmem>>, %arg13: memref<1x1x128xf32, #tpu.memory_space<vmem>>, %arg14: memref<1x1x128xf32, #tpu.memory_space<vmem>>, %arg15: memref<1x128x512xbf16, #tpu.memory_space<vmem>>, %arg16: memref<1x1x512xf32, #tpu.memory_space<vmem>>, %arg17: memref<1x512x128xbf16, #tpu.memory_space<vmem>>, %arg18: memref<1x1x128xf32, #tpu.memory_space<vmem>>, %arg19: memref<1x128xf32, #tpu.memory_space<vmem>>, %arg20: memref<1x128xf32, #tpu.memory_space<vmem>>, %arg21: memref<128x128xbf16, #tpu.memory_space<vmem>>, %arg22: memref<1x128xf32, #tpu.memory_space<vmem>>, %arg23: memref<1x8x128xf32, #tpu.memory_space<vmem>>, %arg24: memref<8x128xf32, #tpu.memory_space<vmem>>) attributes {dimension_semantics = [#tpu.dimension_semantics<parallel>, #tpu.dimension_semantics<arbitrary>], iteration_bounds = array<i64: 2, 2>, scalar_prefetch = 0 : i64, scratch_operands = 1 : i64, tpu.core_type = #tpu.core_type<tc>, window_params = [{transform_indices = @transform_0, window_bounds = array<i64: 1, 8, 128>}, {transform_indices = @transform_1, window_bounds = array<i64: 1, 1, 128>}, {transform_indices = @transform_2, window_bounds = array<i64: 1, 1, 128>}, {transform_indices = @transform_3, window_bounds = array<i64: 1, 4, 128, 32>}, {transform_indices = @transform_4, window_bounds = array<i64: 1, 4, 128, 32>}, {transform_indices = @transform_5, window_bounds = array<i64: 1, 4, 128, 32>}, {transform_indices = @transform_6, window_bounds = array<i64: 1, 4, 1, 32>}, {transform_indices = @transform_7, window_bounds = array<i64: 1, 4, 1, 32>}, {transform_indices = @transform_8, window_bounds = array<i64: 1, 4, 1, 32>}, {transform_indices = @transform_9, window_bounds = array<i64: 1, 4, 32, 128>}, {transform_indices = @transform_10, window_bounds = array<i64: 1, 1, 128>}, {transform_indices = @transform_11, window_bounds = array<i64: 1, 1, 128>}, {transform_indices = @transform_12, window_bounds = array<i64: 1, 1, 128>}, {transform_indices = @transform_13, window_bounds = array<i64: 1, 128, 512>}, {transform_indices = @transform_14, window_bounds = array<i64: 1, 1, 512>}, {transform_indices = @transform_15, window_bounds = array<i64: 1, 512, 128>}, {transform_indices = @transform_16, window_bounds = array<i64: 1, 1, 128>}, {pipeline_mode = #tpu.pipeline_mode<synchronous>, transform_indices = @transform_17, window_bounds = array<i64: 1, 128>}, {pipeline_mode = #tpu.pipeline_mode<synchronous>, transform_indices = @transform_18, window_bounds = array<i64: 1, 128>}, {pipeline_mode = #tpu.pipeline_mode<synchronous>, transform_indices = @transform_19, window_bounds = array<i64: 128, 128>}, {pipeline_mode = #tpu.pipeline_mode<synchronous>, transform_indices = @transform_20, window_bounds = array<i64: 1, 128>}, {transform_indices = @transform_21, window_bounds = array<i64: 1, 8, 128>}]} {
    %c0_i32 = arith.constant 0 : i32
    %0 = arith.cmpi eq, %arg1, %c0_i32 : i32
    %1 = arith.extui %0 : i1 to i32
    %c0_i32_0 = arith.constant 0 : i32
    %2 = arith.cmpi ne, %1, %c0_i32_0 : i32
    scf.if %2 {
      %c0_84 = arith.constant 0 : index
      %c0_85 = arith.constant 0 : index
      %c0_86 = arith.constant 0 : index
      %148 = vector.load %arg2[%c0_84, %c0_85, %c0_86] : memref<1x8x128xf32, #tpu.memory_space<vmem>>, vector<1x8x128xf32>
      %149 = vector.shape_cast %148 : vector<1x8x128xf32> to vector<8x128xf32>
      %c0_87 = arith.constant 0 : index
      %c0_88 = arith.constant 0 : index
      %150 = vector.load %arg24[%c0_87, %c0_88] : memref<8x128xf32, #tpu.memory_space<vmem>>, vector<8x128xf32>
      tpu.vector_store %arg24[%c0_87, %c0_88], %149 {strides = array<i32>} : memref<8x128xf32, #tpu.memory_space<vmem>>, vector<8x128xf32>,
    } else {
    }
    %c0 = arith.constant 0 : index
    %c0_1 = arith.constant 0 : index
    %3 = vector.load %arg24[%c0, %c0_1] : memref<8x128xf32, #tpu.memory_space<vmem>>, vector<8x128xf32>
    %c0_2 = arith.constant 0 : index
    %c0_3 = arith.constant 0 : index
    %c0_4 = arith.constant 0 : index
    %4 = vector.load %arg3[%c0_2, %c0_3, %c0_4] : memref<1x1x128xf32, #tpu.memory_space<vmem>>, vector<1x1x128xf32>
    %5 = vector.shape_cast %4 : vector<1x1x128xf32> to vector<128xf32>
    %c0_5 = arith.constant 0 : index
    %c0_6 = arith.constant 0 : index
    %c0_7 = arith.constant 0 : index
    %6 = vector.load %arg4[%c0_5, %c0_6, %c0_7] : memref<1x1x128xf32, #tpu.memory_space<vmem>>, vector<1x1x128xf32>
    %7 = vector.shape_cast %6 : vector<1x1x128xf32> to vector<128xf32>
    %cst = arith.constant dense<0.000000e+00> : vector<8xf32>
    %8 = vector.multi_reduction <add>, %3, %cst [1] : vector<8x128xf32> to vector<8xf32>
    %9 = vector.shape_cast %8 : vector<8xf32> to vector<8x1xf32>
    %cst_8 = arith.constant 1.280000e+02 : f32
    %10 = vector.broadcast %cst_8 : f32 to vector<8x1xf32>
    %11 = arith.divf %9, %10 : vector<8x1xf32>
    %12 = vector.broadcast %11 : vector<8x1xf32> to vector<8x128xf32>
    %13 = arith.subf %3, %12 : vector<8x128xf32>
    %14 = arith.mulf %13, %13 : vector<8x128xf32>
    %cst_9 = arith.constant dense<0.000000e+00> : vector<8xf32>
    %15 = vector.multi_reduction <add>, %14, %cst_9 [1] : vector<8x128xf32> to vector<8xf32>
    %16 = vector.shape_cast %15 : vector<8xf32> to vector<8x1xf32>
    %cst_10 = arith.constant 1.280000e+02 : f32
    %17 = vector.broadcast %cst_10 : f32 to vector<8x1xf32>
    %18 = arith.divf %16, %17 : vector<8x1xf32>
    %19 = vector.broadcast %11 : vector<8x1xf32> to vector<8x128xf32>
    %20 = arith.subf %3, %19 : vector<8x128xf32>
    %cst_11 = arith.constant 9.99999974E-6 : f32
    %21 = vector.broadcast %cst_11 : f32 to vector<8x1xf32>
    %22 = arith.addf %18, %21 : vector<8x1xf32>
    %23 = math.rsqrt %22 : vector<8x1xf32>
    %24 = vector.broadcast %23 : vector<8x1xf32> to vector<8x128xf32>
    %25 = arith.mulf %20, %24 : vector<8x128xf32>
    %26 = vector.shape_cast %5 : vector<128xf32> to vector<1x128xf32>
    %27 = vector.broadcast %26 : vector<1x128xf32> to vector<8x128xf32>
    %28 = arith.mulf %25, %27 : vector<8x128xf32>
    %29 = vector.shape_cast %7 : vector<128xf32> to vector<1x128xf32>
    %30 = vector.broadcast %29 : vector<1x128xf32> to vector<8x128xf32>
    %31 = arith.addf %28, %30 : vector<8x128xf32>
    %32 = arith.truncf %31 : vector<8x128xf32> to vector<8x128xbf16>
    %33 = vector.shape_cast %32 : vector<8x128xbf16> to vector<1x8x128xbf16>
    %34 = vector.shape_cast %33 : vector<1x8x128xbf16> to vector<1x8x128xbf16>
    %35 = vector.broadcast %34 : vector<1x8x128xbf16> to vector<4x8x128xbf16>
    %c0_12 = arith.constant 0 : index
    %c0_13 = arith.constant 0 : index
    %c0_14 = arith.constant 0 : index
    %c0_15 = arith.constant 0 : index
    %36 = vector.load %arg5[%c0_12, %c0_13, %c0_14, %c0_15] : memref<1x4x128x32xbf16, #tpu.memory_space<vmem>>, vector<1x4x128x32xbf16>
    %37 = vector.shape_cast %36 : vector<1x4x128x32xbf16> to vector<4x128x32xbf16>
    "tpu.trace_start"() <{level = 10 : i32, message = "hnd,hde->hne"}> : () -> ()
    %cst_16 = arith.constant dense<0.000000e+00> : vector<4x8x32xf32>
    %38 = tpu.matmul %35, %37, %cst_16 {dimension_numbers = #tpu.dot_dimension_numbers<[2], [1], [1], [2], [0, 0, 0, 1, 1, 2], [0], [0]>} : vector<4x8x128xbf16>, vector<4x128x32xbf16>, vector<4x8x32xf32> -> vector<4x8x32xf32>
    "tpu.trace_stop"() : () -> ()
    %c0_17 = arith.constant 0 : index
    %c0_18 = arith.constant 0 : index
    %c0_19 = arith.constant 0 : index
    %c0_20 = arith.constant 0 : index
    %39 = vector.load %arg8[%c0_17, %c0_18, %c0_19, %c0_20] : memref<1x4x1x32xf32, #tpu.memory_space<vmem>>, vector<1x4x1x32xf32>
    %40 = vector.shape_cast %39 : vector<1x4x1x32xf32> to vector<4x1x32xf32>
    %41 = vector.broadcast %40 : vector<4x1x32xf32> to vector<4x8x32xf32>
    %42 = arith.addf %38, %41 : vector<4x8x32xf32>
    %c0_21 = arith.constant 0 : index
    %c0_22 = arith.constant 0 : index
    %c0_23 = arith.constant 0 : index
    %c0_24 = arith.constant 0 : index
    %43 = vector.load %arg6[%c0_21, %c0_22, %c0_23, %c0_24] : memref<1x4x128x32xbf16, #tpu.memory_space<vmem>>, vector<1x4x128x32xbf16>
    %44 = vector.shape_cast %43 : vector<1x4x128x32xbf16> to vector<4x128x32xbf16>
    "tpu.trace_start"() <{level = 10 : i32, message = "hnd,hde->hne"}> : () -> ()
    %cst_25 = arith.constant dense<0.000000e+00> : vector<4x8x32xf32>
    %45 = tpu.matmul %35, %44, %cst_25 {dimension_numbers = #tpu.dot_dimension_numbers<[2], [1], [1], [2], [0, 0, 0, 1, 1, 2], [0], [0]>} : vector<4x8x128xbf16>, vector<4x128x32xbf16>, vector<4x8x32xf32> -> vector<4x8x32xf32>
    "tpu.trace_stop"() : () -> ()
    %c0_26 = arith.constant 0 : index
    %c0_27 = arith.constant 0 : index
    %c0_28 = arith.constant 0 : index
    %c0_29 = arith.constant 0 : index
    %46 = vector.load %arg9[%c0_26, %c0_27, %c0_28, %c0_29] : memref<1x4x1x32xf32, #tpu.memory_space<vmem>>, vector<1x4x1x32xf32>
    %47 = vector.shape_cast %46 : vector<1x4x1x32xf32> to vector<4x1x32xf32>
    %48 = vector.broadcast %47 : vector<4x1x32xf32> to vector<4x8x32xf32>
    %49 = arith.addf %45, %48 : vector<4x8x32xf32>
    %c0_30 = arith.constant 0 : index
    %c0_31 = arith.constant 0 : index
    %c0_32 = arith.constant 0 : index
    %c0_33 = arith.constant 0 : index
    %50 = vector.load %arg7[%c0_30, %c0_31, %c0_32, %c0_33] : memref<1x4x128x32xbf16, #tpu.memory_space<vmem>>, vector<1x4x128x32xbf16>
    %51 = vector.shape_cast %50 : vector<1x4x128x32xbf16> to vector<4x128x32xbf16>
    "tpu.trace_start"() <{level = 10 : i32, message = "hnd,hde->hne"}> : () -> ()
    %cst_34 = arith.constant dense<0.000000e+00> : vector<4x8x32xf32>
    %52 = tpu.matmul %35, %51, %cst_34 {dimension_numbers = #tpu.dot_dimension_numbers<[2], [1], [1], [2], [0, 0, 0, 1, 1, 2], [0], [0]>} : vector<4x8x128xbf16>, vector<4x128x32xbf16>, vector<4x8x32xf32> -> vector<4x8x32xf32>
    "tpu.trace_stop"() : () -> ()
    %c0_35 = arith.constant 0 : index
    %c0_36 = arith.constant 0 : index
    %c0_37 = arith.constant 0 : index
    %c0_38 = arith.constant 0 : index
    %53 = vector.load %arg10[%c0_35, %c0_36, %c0_37, %c0_38] : memref<1x4x1x32xf32, #tpu.memory_space<vmem>>, vector<1x4x1x32xf32>
    %54 = vector.shape_cast %53 : vector<1x4x1x32xf32> to vector<4x1x32xf32>
    %55 = vector.broadcast %54 : vector<4x1x32xf32> to vector<4x8x32xf32>
    %56 = arith.addf %52, %55 : vector<4x8x32xf32>
    %57 = arith.truncf %42 : vector<4x8x32xf32> to vector<4x8x32xbf16>
    %58 = arith.truncf %49 : vector<4x8x32xf32> to vector<4x8x32xbf16>
    "tpu.trace_start"() <{level = 10 : i32, message = "hqe,hke->hqk"}> : () -> ()
    %cst_39 = arith.constant dense<0.000000e+00> : vector<4x8x8xf32>
    %59 = tpu.matmul %57, %58, %cst_39 {dimension_numbers = #tpu.dot_dimension_numbers<[2], [2], [1], [1], [0, 0, 0, 1, 1, 1], [0], [0]>} : vector<4x8x32xbf16>, vector<4x8x32xbf16>, vector<4x8x8xf32> -> vector<4x8x8xf32>
    "tpu.trace_stop"() : () -> ()
    %cst_40 = arith.constant dense<0xFF800000> : vector<4x8xf32>
    %60 = vector.multi_reduction <maximumf>, %59, %cst_40 [2] : vector<4x8x8xf32> to vector<4x8xf32>
    %61 = vector.shape_cast %60 : vector<4x8xf32> to vector<4x8x1xf32>
    %62 = vector.broadcast %61 : vector<4x8x1xf32> to vector<4x8x8xf32>
    %63 = arith.subf %59, %62 : vector<4x8x8xf32>
    %64 = math.exp %63 : vector<4x8x8xf32>
    %cst_41 = arith.constant dense<0.000000e+00> : vector<4x8xf32>
    %65 = vector.multi_reduction <add>, %64, %cst_41 [2] : vector<4x8x8xf32> to vector<4x8xf32>
    %66 = vector.shape_cast %65 : vector<4x8xf32> to vector<4x8x1xf32>
    %67 = tpu.reciprocal %66 {approx = true} : vector<4x8x1xf32> -> vector<4x8x1xf32>
    %68 = vector.broadcast %67 : vector<4x8x1xf32> to vector<4x8x8xf32>
    %69 = arith.mulf %64, %68 : vector<4x8x8xf32>
    %70 = arith.truncf %69 : vector<4x8x8xf32> to vector<4x8x8xbf16>
    %71 = arith.truncf %56 : vector<4x8x32xf32> to vector<4x8x32xbf16>
    "tpu.trace_start"() <{level = 10 : i32, message = "hqk,hke->hqe"}> : () -> ()
    %cst_42 = arith.constant dense<0.000000e+00> : vector<4x8x32xf32>
    %72 = tpu.matmul %70, %71, %cst_42 {dimension_numbers = #tpu.dot_dimension_numbers<[2], [1], [1], [2], [0, 0, 0, 1, 1, 2], [0], [0]>} : vector<4x8x8xbf16>, vector<4x8x32xbf16>, vector<4x8x32xf32> -> vector<4x8x32xf32>
    "tpu.trace_stop"() : () -> ()
    %73 = arith.truncf %72 : vector<4x8x32xf32> to vector<4x8x32xbf16>
    %c0_43 = arith.constant 0 : index
    %c0_44 = arith.constant 0 : index
    %c0_45 = arith.constant 0 : index
    %c0_46 = arith.constant 0 : index
    %74 = vector.load %arg11[%c0_43, %c0_44, %c0_45, %c0_46] : memref<1x4x32x128xbf16, #tpu.memory_space<vmem>>, vector<1x4x32x128xbf16>
    %75 = vector.shape_cast %74 : vector<1x4x32x128xbf16> to vector<4x32x128xbf16>
    "tpu.trace_start"() <{level = 10 : i32, message = "hqe,hed->hqd"}> : () -> ()
    %cst_47 = arith.constant dense<0.000000e+00> : vector<4x8x128xf32>
    %76 = tpu.matmul %73, %75, %cst_47 {dimension_numbers = #tpu.dot_dimension_numbers<[2], [1], [1], [2], [0, 0, 0, 1, 1, 2], [0], [0]>} : vector<4x8x32xbf16>, vector<4x32x128xbf16>, vector<4x8x128xf32> -> vector<4x8x128xf32>
    "tpu.trace_stop"() : () -> ()
    %cst_48 = arith.constant dense<0.000000e+00> : vector<8x128xf32>
    %77 = vector.multi_reduction <add>, %76, %cst_48 [0] : vector<4x8x128xf32> to vector<8x128xf32>
    %c0_49 = arith.constant 0 : index
    %c0_50 = arith.constant 0 : index
    %c0_51 = arith.constant 0 : index
    %78 = vector.load %arg12[%c0_49, %c0_50, %c0_51] : memref<1x1x128xf32, #tpu.memory_space<vmem>>, vector<1x1x128xf32>
    %79 = vector.shape_cast %78 : vector<1x1x128xf32> to vector<128xf32>
    %80 = vector.shape_cast %79 : vector<128xf32> to vector<1x128xf32>
    %81 = vector.broadcast %80 : vector<1x128xf32> to vector<8x128xf32>
    %82 = arith.addf %77, %81 : vector<8x128xf32>
    %83 = arith.addf %3, %82 : vector<8x128xf32>
    %c0_52 = arith.constant 0 : index
    %c0_53 = arith.constant 0 : index
    %c0_54 = arith.constant 0 : index
    %84 = vector.load %arg13[%c0_52, %c0_53, %c0_54] : memref<1x1x128xf32, #tpu.memory_space<vmem>>, vector<1x1x128xf32>
    %85 = vector.shape_cast %84 : vector<1x1x128xf32> to vector<128xf32>
    %c0_55 = arith.constant 0 : index
    %c0_56 = arith.constant 0 : index
    %c0_57 = arith.constant 0 : index
    %86 = vector.load %arg14[%c0_55, %c0_56, %c0_57] : memref<1x1x128xf32, #tpu.memory_space<vmem>>, vector<1x1x128xf32>
    %87 = vector.shape_cast %86 : vector<1x1x128xf32> to vector<128xf32>
    %cst_58 = arith.constant dense<0.000000e+00> : vector<8xf32>
    %88 = vector.multi_reduction <add>, %83, %cst_58 [1] : vector<8x128xf32> to vector<8xf32>
    %89 = vector.shape_cast %88 : vector<8xf32> to vector<8x1xf32>
    %cst_59 = arith.constant 1.280000e+02 : f32
    %90 = vector.broadcast %cst_59 : f32 to vector<8x1xf32>
    %91 = arith.divf %89, %90 : vector<8x1xf32>
    %92 = vector.broadcast %91 : vector<8x1xf32> to vector<8x128xf32>
    %93 = arith.subf %83, %92 : vector<8x128xf32>
    %94 = arith.mulf %93, %93 : vector<8x128xf32>
    %cst_60 = arith.constant dense<0.000000e+00> : vector<8xf32>
    %95 = vector.multi_reduction <add>, %94, %cst_60 [1] : vector<8x128xf32> to vector<8xf32>
    %96 = vector.shape_cast %95 : vector<8xf32> to vector<8x1xf32>
    %cst_61 = arith.constant 1.280000e+02 : f32
    %97 = vector.broadcast %cst_61 : f32 to vector<8x1xf32>
    %98 = arith.divf %96, %97 : vector<8x1xf32>
    %99 = vector.broadcast %91 : vector<8x1xf32> to vector<8x128xf32>
    %100 = arith.subf %83, %99 : vector<8x128xf32>
    %cst_62 = arith.constant 9.99999974E-6 : f32
    %101 = vector.broadcast %cst_62 : f32 to vector<8x1xf32>
    %102 = arith.addf %98, %101 : vector<8x1xf32>
    %103 = math.rsqrt %102 : vector<8x1xf32>
    %104 = vector.broadcast %103 : vector<8x1xf32> to vector<8x128xf32>
    %105 = arith.mulf %100, %104 : vector<8x128xf32>
    %106 = vector.shape_cast %85 : vector<128xf32> to vector<1x128xf32>
    %107 = vector.broadcast %106 : vector<1x128xf32> to vector<8x128xf32>
    %108 = arith.mulf %105, %107 : vector<8x128xf32>
    %109 = vector.shape_cast %87 : vector<128xf32> to vector<1x128xf32>
    %110 = vector.broadcast %109 : vector<1x128xf32> to vector<8x128xf32>
    %111 = arith.addf %108, %110 : vector<8x128xf32>
    %112 = arith.truncf %111 : vector<8x128xf32> to vector<8x128xbf16>
    %c0_63 = arith.constant 0 : index
    %c0_64 = arith.constant 0 : index
    %c0_65 = arith.constant 0 : index
    %113 = vector.load %arg15[%c0_63, %c0_64, %c0_65] : memref<1x128x512xbf16, #tpu.memory_space<vmem>>, vector<1x128x512xbf16>
    %114 = vector.shape_cast %113 : vector<1x128x512xbf16> to vector<128x512xbf16>
    %cst_66 = arith.constant dense<0.000000e+00> : vector<8x512xf32>
    %115 = tpu.matmul %112, %114, %cst_66 {dimension_numbers = #tpu.dot_dimension_numbers<[1], [0], [0], [1], [0, 0, 1, 1], [], []>} : vector<8x128xbf16>, vector<128x512xbf16>, vector<8x512xf32> -> vector<8x512xf32>
    %c0_67 = arith.constant 0 : index
    %c0_68 = arith.constant 0 : index
    %c0_69 = arith.constant 0 : index
    %116 = vector.load %arg16[%c0_67, %c0_68, %c0_69] : memref<1x1x512xf32, #tpu.memory_space<vmem>>, vector<1x1x512xf32>
    %117 = vector.shape_cast %116 : vector<1x1x512xf32> to vector<512xf32>
    %118 = vector.shape_cast %117 : vector<512xf32> to vector<1x512xf32>
    %119 = vector.broadcast %118 : vector<1x512xf32> to vector<8x512xf32>
    %120 = arith.addf %115, %119 : vector<8x512xf32>
    %121 = arith.mulf %120, %120 : vector<8x512xf32>
    %122 = arith.mulf %120, %121 : vector<8x512xf32>
    %cst_70 = arith.constant 4.471500e-02 : f32
    %123 = vector.broadcast %cst_70 : f32 to vector<8x512xf32>
    %124 = arith.mulf %123, %122 : vector<8x512xf32>
    %125 = arith.addf %120, %124 : vector<8x512xf32>
    %cst_71 = arith.constant 0.797884583 : f32
    %126 = vector.broadcast %cst_71 : f32 to vector<8x512xf32>
    %127 = arith.mulf %126, %125 : vector<8x512xf32>
    %128 = math.tanh %127 : vector<8x512xf32>
    %cst_72 = arith.constant 1.000000e+00 : f32
    %129 = vector.broadcast %cst_72 : f32 to vector<8x512xf32>
    %130 = arith.addf %129, %128 : vector<8x512xf32>
    %cst_73 = arith.constant 5.000000e-01 : f32
    %131 = vector.broadcast %cst_73 : f32 to vector<8x512xf32>
    %132 = arith.mulf %131, %130 : vector<8x512xf32>
    %133 = arith.mulf %120, %132 : vector<8x512xf32>
    %134 = arith.truncf %133 : vector<8x512xf32> to vector<8x512xbf16>
    %c0_74 = arith.constant 0 : index
    %c0_75 = arith.constant 0 : index
    %c0_76 = arith.constant 0 : index
    %135 = vector.load %arg17[%c0_74, %c0_75, %c0_76] : memref<1x512x128xbf16, #tpu.memory_space<vmem>>, vector<1x512x128xbf16>
    %136 = vector.shape_cast %135 : vector<1x512x128xbf16> to vector<512x128xbf16>
    %cst_77 = arith.constant dense<0.000000e+00> : vector<8x128xf32>
    %137 = tpu.matmul %134, %136, %cst_77 {dimension_numbers = #tpu.dot_dimension_numbers<[1], [0], [0], [1], [0, 0, 1, 1], [], []>} : vector<8x512xbf16>, vector<512x128xbf16>, vector<8x128xf32> -> vector<8x128xf32>
    %c0_78 = arith.constant 0 : index
    %c0_79 = arith.constant 0 : index
    %c0_80 = arith.constant 0 : index
    %138 = vector.load %arg18[%c0_78, %c0_79, %c0_80] : memref<1x1x128xf32, #tpu.memory_space<vmem>>, vector<1x1x128xf32>
    %139 = vector.shape_cast %138 : vector<1x1x128xf32> to vector<128xf32>
    %140 = vector.shape_cast %139 : vector<128xf32> to vector<1x128xf32>
    %141 = vector.broadcast %140 : vector<1x128xf32> to vector<8x128xf32>
    %142 = arith.addf %137, %141 : vector<8x128xf32>
    %143 = arith.addf %83, %142 : vector<8x128xf32>
    %c0_81 = arith.constant 0 : index
    %c0_82 = arith.constant 0 : index
    %144 = vector.load %arg24[%c0_81, %c0_82] : memref<8x128xf32, #tpu.memory_space<vmem>>, vector<8x128xf32>
    tpu.vector_store %arg24[%c0_81, %c0_82], %143 {strides = array<i32>} : memref<8x128xf32, #tpu.memory_space<vmem>>, vector<8x128xf32>,
    %c1_i32 = arith.constant 1 : i32
    %145 = arith.cmpi eq, %arg1, %c1_i32 : i32
    %146 = arith.extui %145 : i1 to i32
    %c0_i32_83 = arith.constant 0 : i32
    %147 = arith.cmpi ne, %146, %c0_i32_83 : i32
    scf.if %147 {
      %c0_84 = arith.constant 0 : index
      %c0_85 = arith.constant 0 : index
      %148 = vector.load %arg19[%c0_84, %c0_85] : memref<1x128xf32, #tpu.memory_space<vmem>>, vector<1x128xf32>
      %149 = vector.shape_cast %148 : vector<1x128xf32> to vector<128xf32>
      %c0_86 = arith.constant 0 : index
      %c0_87 = arith.constant 0 : index
      %150 = vector.load %arg20[%c0_86, %c0_87] : memref<1x128xf32, #tpu.memory_space<vmem>>, vector<1x128xf32>
      %151 = vector.shape_cast %150 : vector<1x128xf32> to vector<128xf32>
      %cst_88 = arith.constant dense<0.000000e+00> : vector<8xf32>
      %152 = vector.multi_reduction <add>, %143, %cst_88 [1] : vector<8x128xf32> to vector<8xf32>
      %153 = vector.shape_cast %152 : vector<8xf32> to vector<8x1xf32>
      %cst_89 = arith.constant 1.280000e+02 : f32
      %154 = vector.broadcast %cst_89 : f32 to vector<8x1xf32>
      %155 = arith.divf %153, %154 : vector<8x1xf32>
      %156 = vector.broadcast %155 : vector<8x1xf32> to vector<8x128xf32>
      %157 = arith.subf %143, %156 : vector<8x128xf32>
      %158 = arith.mulf %157, %157 : vector<8x128xf32>
      %cst_90 = arith.constant dense<0.000000e+00> : vector<8xf32>
      %159 = vector.multi_reduction <add>, %158, %cst_90 [1] : vector<8x128xf32> to vector<8xf32>
      %160 = vector.shape_cast %159 : vector<8xf32> to vector<8x1xf32>
      %cst_91 = arith.constant 1.280000e+02 : f32
      %161 = vector.broadcast %cst_91 : f32 to vector<8x1xf32>
      %162 = arith.divf %160, %161 : vector<8x1xf32>
      %163 = vector.broadcast %155 : vector<8x1xf32> to vector<8x128xf32>
      %164 = arith.subf %143, %163 : vector<8x128xf32>
      %cst_92 = arith.constant 9.99999974E-6 : f32
      %165 = vector.broadcast %cst_92 : f32 to vector<8x1xf32>
      %166 = arith.addf %162, %165 : vector<8x1xf32>
      %167 = math.rsqrt %166 : vector<8x1xf32>
      %168 = vector.broadcast %167 : vector<8x1xf32> to vector<8x128xf32>
      %169 = arith.mulf %164, %168 : vector<8x128xf32>
      %170 = vector.shape_cast %149 : vector<128xf32> to vector<1x128xf32>
      %171 = vector.broadcast %170 : vector<1x128xf32> to vector<8x128xf32>
      %172 = arith.mulf %169, %171 : vector<8x128xf32>
      %173 = vector.shape_cast %151 : vector<128xf32> to vector<1x128xf32>
      %174 = vector.broadcast %173 : vector<1x128xf32> to vector<8x128xf32>
      %175 = arith.addf %172, %174 : vector<8x128xf32>
      %176 = arith.truncf %175 : vector<8x128xf32> to vector<8x128xbf16>
      %c0_93 = arith.constant 0 : index
      %c0_94 = arith.constant 0 : index
      %177 = vector.load %arg21[%c0_93, %c0_94] : memref<128x128xbf16, #tpu.memory_space<vmem>>, vector<128x128xbf16>
      %cst_95 = arith.constant dense<0.000000e+00> : vector<8x128xf32>
      %178 = tpu.matmul %176, %177, %cst_95 {dimension_numbers = #tpu.dot_dimension_numbers<[1], [0], [0], [1], [0, 0, 1, 1], [], []>} : vector<8x128xbf16>, vector<128x128xbf16>, vector<8x128xf32> -> vector<8x128xf32>
      %c0_96 = arith.constant 0 : index
      %c0_97 = arith.constant 0 : index
      %179 = vector.load %arg22[%c0_96, %c0_97] : memref<1x128xf32, #tpu.memory_space<vmem>>, vector<1x128xf32>
      %180 = vector.shape_cast %179 : vector<1x128xf32> to vector<128xf32>
      %181 = vector.shape_cast %180 : vector<128xf32> to vector<1x128xf32>
      %182 = vector.broadcast %181 : vector<1x128xf32> to vector<8x128xf32>
      %183 = arith.addf %178, %182 : vector<8x128xf32>
      %c0_98 = arith.constant 0 : index
      %c0_99 = arith.constant 0 : index
      %c0_100 = arith.constant 0 : index
      %184 = vector.load %arg23[%c0_98, %c0_99, %c0_100] : memref<1x8x128xf32, #tpu.memory_space<vmem>>, vector<1x8x128xf32>
      %185 = vector.shape_cast %184 : vector<1x8x128xf32> to vector<8x128xf32>
      %186 = vector.shape_cast %183 : vector<8x128xf32> to vector<1x8x128xf32>
      tpu.vector_store %arg23[%c0_98, %c0_99, %c0_100], %186 {strides = array<i32>} : memref<1x8x128xf32, #tpu.memory_space<vmem>>, vector<1x8x128xf32>,
    } else {
    }
    return
  }
  func.func @transform_0(%arg0: i32, %arg1: i32) -> (i32, i32, i32) {
    %c0_i32 = arith.constant 0 : i32
    %c0_i32_0 = arith.constant 0 : i32
    %c0_i32_1 = arith.constant 0 : i32
    return %arg0, %c0_i32, %c0_i32_0 : i32, i32, i32
  }
  func.func @transform_1(%arg0: i32, %arg1: i32) -> (i32, i32, i32) {
    %c0_i32 = arith.constant 0 : i32
    %c0_i32_0 = arith.constant 0 : i32
    %c0_i32_1 = arith.constant 0 : i32
    return %arg1, %c0_i32, %c0_i32_0 : i32, i32, i32
  }
  func.func @transform_2(%arg0: i32, %arg1: i32) -> (i32, i32, i32) {
    %c0_i32 = arith.constant 0 : i32
    %c0_i32_0 = arith.constant 0 : i32
    %c0_i32_1 = arith.constant 0 : i32
    return %arg1, %c0_i32, %c0_i32_0 : i32, i32, i32
  }
  func.func @transform_3(%arg0: i32, %arg1: i32) -> (i32, i32, i32, i32) {
    %c0_i32 = arith.constant 0 : i32
    %c0_i32_0 = arith.constant 0 : i32
    %c0_i32_1 = arith.constant 0 : i32
    %c0_i32_2 = arith.constant 0 : i32
    return %arg1, %c0_i32, %c0_i32_0, %c0_i32_1 : i32, i32, i32, i32
  }
  func.func @transform_4(%arg0: i32, %arg1: i32) -> (i32, i32, i32, i32) {
    %c0_i32 = arith.constant 0 : i32
    %c0_i32_0 = arith.constant 0 : i32
    %c0_i32_1 = arith.constant 0 : i32
    %c0_i32_2 = arith.constant 0 : i32
    return %arg1, %c0_i32, %c0_i32_0, %c0_i32_1 : i32, i32, i32, i32
  }
  func.func @transform_5(%arg0: i32, %arg1: i32) -> (i32, i32, i32, i32) {
    %c0_i32 = arith.constant 0 : i32
    %c0_i32_0 = arith.constant 0 : i32
    %c0_i32_1 = arith.constant 0 : i32
    %c0_i32_2 = arith.constant 0 : i32
    return %arg1, %c0_i32, %c0_i32_0, %c0_i32_1 : i32, i32, i32, i32
  }
  func.func @transform_6(%arg0: i32, %arg1: i32) -> (i32, i32, i32, i32) {
    %c0_i32 = arith.constant 0 : i32
    %c0_i32_0 = arith.constant 0 : i32
    %c0_i32_1 = arith.constant 0 : i32
    %c0_i32_2 = arith.constant 0 : i32
    return %arg1, %c0_i32, %c0_i32_0, %c0_i32_1 : i32, i32, i32, i32
  }
  func.func @transform_7(%arg0: i32, %arg1: i32) -> (i32, i32, i32, i32) {
    %c0_i32 = arith.constant 0 : i32
    %c0_i32_0 = arith.constant 0 : i32
    %c0_i32_1 = arith.constant 0 : i32
    %c0_i32_2 = arith.constant 0 : i32
    return %arg1, %c0_i32, %c0_i32_0, %c0_i32_1 : i32, i32, i32, i32
  }
  func.func @transform_8(%arg0: i32, %arg1: i32) -> (i32, i32, i32, i32) {
    %c0_i32 = arith.constant 0 : i32
    %c0_i32_0 = arith.constant 0 : i32
    %c0_i32_1 = arith.constant 0 : i32
    %c0_i32_2 = arith.constant 0 : i32
    return %arg1, %c0_i32, %c0_i32_0, %c0_i32_1 : i32, i32, i32, i32
  }
  func.func @transform_9(%arg0: i32, %arg1: i32) -> (i32, i32, i32, i32) {
    %c0_i32 = arith.constant 0 : i32
    %c0_i32_0 = arith.constant 0 : i32
    %c0_i32_1 = arith.constant 0 : i32
    %c0_i32_2 = arith.constant 0 : i32
    return %arg1, %c0_i32, %c0_i32_0, %c0_i32_1 : i32, i32, i32, i32
  }
  func.func @transform_10(%arg0: i32, %arg1: i32) -> (i32, i32, i32) {
    %c0_i32 = arith.constant 0 : i32
    %c0_i32_0 = arith.constant 0 : i32
    %c0_i32_1 = arith.constant 0 : i32
    return %arg1, %c0_i32, %c0_i32_0 : i32, i32, i32
  }
  func.func @transform_11(%arg0: i32, %arg1: i32) -> (i32, i32, i32) {
    %c0_i32 = arith.constant 0 : i32
    %c0_i32_0 = arith.constant 0 : i32
    %c0_i32_1 = arith.constant 0 : i32
    return %arg1, %c0_i32, %c0_i32_0 : i32, i32, i32
  }
  func.func @transform_12(%arg0: i32, %arg1: i32) -> (i32, i32, i32) {
    %c0_i32 = arith.constant 0 : i32
    %c0_i32_0 = arith.constant 0 : i32
    %c0_i32_1 = arith.constant 0 : i32
    return %arg1, %c0_i32, %c0_i32_0 : i32, i32, i32
  }
  func.func @transform_13(%arg0: i32, %arg1: i32) -> (i32, i32, i32) {
    %c0_i32 = arith.constant 0 : i32
    %c0_i32_0 = arith.constant 0 : i32
    %c0_i32_1 = arith.constant 0 : i32
    return %arg1, %c0_i32, %c0_i32_0 : i32, i32, i32
  }
  func.func @transform_14(%arg0: i32, %arg1: i32) -> (i32, i32, i32) {
    %c0_i32 = arith.constant 0 : i32
    %c0_i32_0 = arith.constant 0 : i32
    %c0_i32_1 = arith.constant 0 : i32
    return %arg1, %c0_i32, %c0_i32_0 : i32, i32, i32
  }
  func.func @transform_15(%arg0: i32, %arg1: i32) -> (i32, i32, i32) {
    %c0_i32 = arith.constant 0 : i32
    %c0_i32_0 = arith.constant 0 : i32
    %c0_i32_1 = arith.constant 0 : i32
    return %arg1, %c0_i32, %c0_i32_0 : i32, i32, i32
  }
  func.func @transform_16(%arg0: i32, %arg1: i32) -> (i32, i32, i32) {
    %c0_i32 = arith.constant 0 : i32
    %c0_i32_0 = arith.constant 0 : i32
    %c0_i32_1 = arith.constant 0 : i32
    return %arg1, %c0_i32, %c0_i32_0 : i32, i32, i32
  }
  func.func @transform_17(%arg0: i32, %arg1: i32) -> (i32, i32) {
    %c0_i32 = arith.constant 0 : i32
    %c0_i32_0 = arith.constant 0 : i32
    %c0_i32_1 = arith.constant 0 : i32
    return %c0_i32, %c0_i32_0 : i32, i32
  }
  func.func @transform_18(%arg0: i32, %arg1: i32) -> (i32, i32) {
    %c0_i32 = arith.constant 0 : i32
    %c0_i32_0 = arith.constant 0 : i32
    %c0_i32_1 = arith.constant 0 : i32
    return %c0_i32, %c0_i32_0 : i32, i32
  }
  func.func @transform_19(%arg0: i32, %arg1: i32) -> (i32, i32) {
    %c0_i32 = arith.constant 0 : i32
    %c0_i32_0 = arith.constant 0 : i32
    %c0_i32_1 = arith.constant 0 : i32
    return %c0_i32, %c0_i32_0 : i32, i32
  }
  func.func @transform_20(%arg0: i32, %arg1: i32) -> (i32, i32) {
    %c0_i32 = arith.constant 0 : i32
    %c0_i32_0 = arith.constant 0 : i32
    %c0_i32_1 = arith.constant 0 : i32
    return %c0_i32, %c0_i32_0 : i32, i32
  }
  func.func @transform_21(%arg0: i32, %arg1: i32) -> (i32, i32, i32) {
    %c0_i32 = arith.constant 0 : i32
    %c0_i32_0 = arith.constant 0 : i32
    %c0_i32_1 = arith.constant 0 : i32
    return %arg0, %c0_i32, %c0_i32_0 : i32, i32, i32
  }
}

</mosaic_0001>

<bundles_post_ra>
// kernel: tpu_custom_call.1
= control target key start
LH: loop header
LB: loop body
LE: loop exit
PB: predicated region body
PF: predicated region fallthrough
CT: control target
= control target key end

     0   :  { %s5150_s0 = inlined_call_operand.vmem [shape: f32[2,8,128], index: 0, kind: input, shape index: {}]   ;;  %s5151_s1 = inlined_call_operand.vmem [shape: f32[2,1,128], index: 1, kind: input, shape index: {}]   ;;  %s5152_s2 = inlined_call_operand.vmem [shape: f32[2,1,128], index: 2, kind: input, shape index: {}]   ;;  %s5153_s3 = inlined_call_operand.vmem [shape: bf16[2,4,128,32], index: 3, kind: input, shape index: {}]   ;;  %s5154_s4 = inlined_call_operand.vmem [shape: bf16[2,4,128,32], index: 4, kind: input, shape index: {}]   ;;  %s5155_s5 = inlined_call_operand.vmem [shape: bf16[2,4,128,32], index: 5, kind: input, shape index: {}]   ;;  %s5156_s6 = inlined_call_operand.vmem [shape: f32[2,4,1,32], index: 6, kind: input, shape index: {}]   ;;  %s5157_s7 = inlined_call_operand.vmem [shape: f32[2,4,1,32], index: 7, kind: input, shape index: {}]   ;;  %s5158_s8 = inlined_call_operand.vmem [shape: f32[2,4,1,32], index: 8, kind: input, shape index: {}]   ;;  %s5159_s9 = inlined_call_operand.vmem [shape: bf16[2,4,32,128], index: 9, kind: input, shape index: {}]   ;;  %s5160_s10 = inlined_call_operand.vmem [shape: f32[2,1,128], index: 10, kind: input, shape index: {}]   ;;  %s5161_s11 = inlined_call_operand.vmem [shape: f32[2,1,128], index: 11, kind: input, shape index: {}]   ;;  %s5162_s12 = inlined_call_operand.vmem [shape: f32[2,1,128], index: 12, kind: input, shape index: {}]   ;;  %s5163_s13 = inlined_call_operand.vmem [shape: bf16[2,128,512], index: 13, kind: input, shape index: {}]   ;;  %s5164_s14 = inlined_call_operand.vmem [shape: f32[2,1,512], index: 14, kind: input, shape index: {}]   ;;  %s5165_s15 = inlined_call_operand.vmem [shape: bf16[2,512,128], index: 15, kind: input, shape index: {}]   ;;  %s5166_s16 = inlined_call_operand.vmem [shape: f32[2,1,128], index: 16, kind: input, shape index: {}]   ;;  %s5167_s17 = inlined_call_operand.vmem [shape: f32[1,128], index: 17, kind: input, shape index: {}]   ;;  %s5168_s18 = inlined_call_operand.vmem [shape: f32[1,128], index: 18, kind: input, shape index: {}]   ;;  %s5169_s19 = inlined_call_operand.vmem [shape: bf16[128,128], index: 19, kind: input, shape index: {}]   ;;  %s5170_s20 = inlined_call_operand.vmem [shape: f32[1,128], index: 20, kind: input, shape index: {}]   ;;  %s5171_s21 = inlined_call_operand.hbm [shape: f32[2,8,128], index: 21, kind: output, shape index: {}]  }
   0x1   :  { %5190 = sst [smem:[#allocation21_spill]] %s5150_s0 }
   0x2   :  { %5191 = sst [smem:[#allocation22_spill]] %s5151_s1 }
   0x3   :  { %5192 = sst [smem:[#allocation23_spill]] %s5152_s2 }
   0x4   :  { %5193 = sst [smem:[#allocation24_spill]] %s5153_s3 }
   0x5   :  { %5194 = sst [smem:[#allocation25_spill]] %s5154_s4 }
   0x6   :  { %5195 = sst [smem:[#allocation26_spill]] %s5155_s5 }
   0x7   :  { %5196 = sst [smem:[#allocation27_spill]] %s5156_s6 }
   0x8   :  { %5197 = sst [smem:[#allocation28_spill]] %s5157_s7 }
   0x9   :  { %5198 = sst [smem:[#allocation29_spill]] %s5158_s8 }
   0xa   :  { %5199 = sst [smem:[#allocation30_spill]] %s5159_s9 }
   0xb   :  { %5200 = sst [smem:[#allocation31_spill]] %s5161_s11 }
   0xc   :  { %5201 = sst [smem:[#allocation32_spill]] %s5165_s15 }
   0xd   :  { %5202 = sst [smem:[#allocation33_spill]] %s5166_s16 }
   0xe   :  { %5203 = sst [smem:[#allocation34_spill]] %s5167_s17 }
   0xf   :  { %5204 = sst [smem:[#allocation35_spill]] %s5168_s18 }
  0x10   :  { %5205 = sst [smem:[#allocation36_spill]] %s5169_s19 }
  0x11   :  { %5206 = sst [smem:[#allocation37_spill]] %s5170_s20 }
  0x12   :  { %5207 = sst [smem:[#allocation38_spill]] %s5171_s21 }
  0x13   :  { %26 = vsyncpa [#allocation4], 0 }
  0x14   :  { %28 = vsyncpa [#allocation4 + $0x1], 0  ;;  %s4585_s2 = smov 0   ;;  %s4587_s25 = smov 0  }
  0x15   :  { %s4589_s26 = smov 0   ;;  %s4591_s27 = smov 0  }
  0x16   :  { %s4593_s3 = smov 0   ;;  %s4595_s28 = smov 0  }
  0x17   :  { %s4597_s29 = smov 0   ;;  %s4599_s0 = smov 0  }
  0x18 LB: > { %5208 = sst [smem:[#allocation6_spill]] %s4444_s2  ;;  %s3326_s4 = sadd.s32 4294967295, %s4472_s0   ;;  %s4472_s0 = sphi %s4599_s0, %s34_s0   ;;  %s4468_s29 = sphi %s4597_s29, %s5269_s29   ;;  %s4464_s28 = sphi %s4595_s28, %s5268_s28   ;;  %s4460_s3 = sphi %s4593_s3, %s5267_s3   ;;  %s4456_s27 = sphi %s4591_s27, %s5266_s27   ;;  %s4452_s26 = sphi %s4589_s26, %s5265_s26   ;;  %s4448_s25 = sphi %s4587_s25, %s5264_s25   ;;  %s4444_s2 = sphi %s4585_s2, %s5263_s2  }
  0x19   : > { %5209 = sst [smem:[#allocation7_spill]] %s4448_s25  ;;  %s3327_s30 = sadd.s32 4294967294, %s4472_s0  }
  0x1a   : > { %5210 = sst [smem:[#allocation8_spill]] %s4452_s26  ;;  %s43_s5 = sadd.s32 1, %s4464_s28 }
  0x1b   : > { %5211 = sst [smem:[#allocation9_spill]] %s4456_s27  ;;  %p44_p0 = scmp.ge.s32.totalorder %s43_s5, 2 }
  0x1c   : > { %5212 = sst [smem:[#allocation10_spill]] %s4460_s3  ;;  %s46_s22 = sadd.s32 1, %s4468_s29 }
  0x1d   : > { %5213 = sst [smem:[#allocation11_spill]] %s4464_s28  ;;  %p589_p1 = scmp.ne.s32.totalorder %s4452_s26, %s4448_s25 }
  0x1e   : > { %5214 = sst [smem:[#allocation12_spill]] %s4468_s29  ;;  %p590_p2 = scmp.eq.s32.totalorder %s3326_s4, 3 }
  0x1f   : > { %5215 = sst [smem:[#allocation13_spill]] %s4472_s0  ;;  %s5271_s5 = smov (%p44_p0, %s43_s5), 0 }
  0x20   : > { %5216 = sst [smem:[#allocation14_spill]] %s5271_s5  ;;  %s5273_s22 = smov (!%p44_p0, %s46_s22), %s4468_s29 }
  0x21   : > { %p4634_p3 = por %p590_p2, %p589_p1  ;;  %p595_p4 = scmp.ne.s32.totalorder %s4448_s25, %s4444_s2 }
  0x22   : > { %p48_p5 = scmp.ge.s32.totalorder %s5273_s22, 2  ;;  %p596_p6 = scmp.eq.s32.totalorder %s3327_s30, 3 }
  0x23   : > { %s5217_s23 = scalar_select %p4634_p3, 1, 0 }
  0x24   : > { %p3330_p7 = scmp.ge.s32.totalorder %s4472_s0, 1  ;;  %p745_p8 = scmp.lt.s32.totalorder %s4472_s0, 5 }
  0x25   : > { %5218 = sst [smem:[#allocation15_spill]] %s5217_s23  ;;  %s5275_s22 = smov (%p48_p5, %s5273_s22), 0 }
  0x26   : > { %5219 = sst [smem:[#allocation16_spill]] %s5275_s22  ;;  %p4644_p9 = por %p596_p6, %p595_p4 }
  0x27   : > { %p746_p10 = pnand %p3330_p7, %p745_p8  ;;  %s576_s24 = ssub.s32 %s4468_s29, %s5275_s22 }
  0x28   : > { %s5220_s1 = scalar_select %p4644_p9, 1, 0 }
  0x29   : > { %s579_s4 = sadd.s32 1, %s4452_s26  ;;  %p577_p11 = scmp.eq.s32.totalorder %s576_s24, 0 }
  0x2a   : > { %5221 = sst [smem:[#allocation17_spill]] %s5220_s1  ;;  %749 = sbr.rel (%p746_p10) target bundleno = 2178 (0x882), region = 104 }
  0x2b   : > { %s4652_s5 = scalar_select %p577_p11, %s4452_s26, %s579_s4  }
  0x2d   : > { %5222 = sst [smem:[#allocation18_spill]] %s4652_s5 }
  0x2f   : > { %s5178_s30 = sand.u32 1, %s4448_s25   ;;  %p868_p12 = scmp.lt.s32.totalorder %s4460_s3, 1 }
  0x30   : > { %s4658_s28 = sshll.u32 %s5178_s30, 3  ;;  %p872_p13 = scmp.lt.s32.totalorder %s4456_s27, 1 }
  0x31   : > { %s869_s1 = scalar_select %p868_p12, %s4460_s3, 1 }
  0x32   : > { %s4663_s2 = scalar_select %p872_p13, %s4456_s27, 1 }
  0x33   : > { %s3332_s24 = sshll.u32 %s869_s1, 3  ;;  %s5223_s29 = sld [smem:[#allocation21_spill]] }
  0x34   : > { %s4071_s18 = sshll.u32 %s4663_s2, 8  ;;  %s5226_s27 = sld [smem:[#allocation24_spill]] }
  0x35   : > { %s5227_s22 = sld [smem:[#allocation25_spill]]  ;;  %s4693_s25 = sshll.u32 %s4663_s2, 2 }
  0x36   : > { %s5228_s0 = sld [smem:[#allocation26_spill]]  ;;  %s918_s4 = scalar_lea.vmem %s5162_s12, %s4663_s2 }
  0x37   : > { %s5229_s6 = sld [smem:[#allocation27_spill]] }
  0x38   : > { %s5231_s7 = sld [smem:[#allocation28_spill]] }
  0x39   : > { %s871_s5 = scalar_lea.vmem %s5223_s29, %s3332_s24  ;;  %s5232_s8 = sld [smem:[#allocation29_spill]] }
  0x3a   : > { %s4680_s16 = scalar_lea.vmem %s5226_s27, %s4071_s18  ;;  %s4074_s24 = sshll.u32 %s4663_s2, 6 }
  0x3b   : > { %s4685_s29 = scalar_lea.vmem %s5227_s22, %s4071_s18  ;;  %s5234_s9 = sld [smem:[#allocation30_spill]] }
  0x3c   : > { %s4690_s30 = scalar_lea.vmem %s5228_s0, %s4071_s18  ;;  %s927_s0 = scalar_lea.vmem %s5164_s14, %s4693_s25 }
  0x3d   : > { %s4699_s17 = scalar_lea.vmem %s5229_s6, %s4693_s25  ;;  %s5236_s23 = sld [smem:[#allocation32_spill]] }
  0x3e   : > { %5230 = sst [smem:[#allocation19_spill]] %s4699_s17  ;;  %s4705_s27 = scalar_lea.vmem %s5231_s7, %s4693_s25 }
  0x3f   : > { %s4711_s22 = scalar_lea.vmem %s5232_s8, %s4693_s25  ;;  %s5237_s15 = sld [smem:[#allocation33_spill]] }
  0x40   : > { %5233 = sst [smem:[#allocation20_spill]] %s4711_s22  ;;  %s4734_s22 = scalar_lea.vmem %s5163_s13, %s4071_s18 }
  0x41   : > { %s4717_s3 = scalar_lea.vmem %s5234_s9, %s4074_s24  ;;  %s867_s7 = scalar_lea.vmem [#allocation3], %s4658_s28 }
  0x42   : > { %s5238_s19 = sld [smem:[#allocation9_spill]] }
  0x43   : > { %s4743_s21 = scalar_lea.vmem %s5236_s23, %s4071_s18 }
  0x45   : > { %s935_s11 = scalar_lea.vmem %s5237_s15, %s4663_s2 }
  0x48   : > { %p3349_p0 = scmp.ne.s32.totalorder %s5238_s19, 0 }
  0x4a   : > { %940 = sbr.rel (%p3349_p0) target bundleno = 81 (0x51), region = 108 }
  0x4f   : > { %v941_v0 = vld [vmem:[%s871_s5] sm:$0xff] }
  0x50   : > { %942 = vst [vmem:[#allocation2] sm:$0xff] %v941_v0 }
  0x51 PF: > { %v4474_v2 = vmov 128.0   ;;  %v4084_v3 = vld [vmem:[%s4680_s16 + $0x38] sm:$0xff]  ;;  %v4083_v7 = vld [vmem:[%s4680_s16 + $0x30] sm:$0xff]  ;;  %v4082_v12 = vld [vmem:[%s4680_s16 + $0x28] sm:$0xff]  ;;  %s5241_s15 = sld [smem:[#allocation23_spill]]  ;;  %vm1962_vm4 = vcmask 261120   ;;  %s5245_s24 = scalar_lea.vmem %s5160_s10, %s4663_s2 }
  0x52   : > { %4343 = vrcp.f32 %v4474_v2  ;;  %v4092_v4 = vld [vmem:[%s4680_s16 + $0x78] sm:$0xff]  ;;  %1110 = vmatpush.bf16.msra.mxu0 %v4084_v3  ;;  %v4091_v8 = vld [vmem:[%s4680_s16 + $0x70] sm:$0xff]  ;;  %v4090_v13 = vld [vmem:[%s4680_s16 + $0x68] sm:$0xff]  ;;  %s5243_s26 = sld [smem:[#allocation19_spill]]  ;;  %vm2095_vm5 = vcmask 1043456   ;;  %vm2039_vm6 = vcmask 64512  }
  0x53   : > { %v4100_v5 = vld [vmem:[%s4680_s16 + $0xb8] sm:$0xff]  ;;  %1171 = vmatpush.bf16.msra.mxu1 %v4092_v4  ;;  %v4099_v9 = vld [vmem:[%s4680_s16 + $0xb0] sm:$0xff]  ;;  %v4098_v15 = vld [vmem:[%s4680_s16 + $0xa8] sm:$0xff]  ;;  %s5246_s23 = sld [smem:[#allocation31_spill]] }
  0x54   : > { %v4108_v6 = vld [vmem:[%s4680_s16 + $0xf8] sm:$0xff]  ;;  %1232 = vmatpush.bf16.msra.mxu2 %v4100_v5  ;;  %v4107_v10 = vld [vmem:[%s4680_s16 + $0xf0] sm:$0xff]  ;;  %v4106_v16 = vld [vmem:[%s4680_s16 + $0xe8] sm:$0xff]  ;;  %s5249_s9 = sld [smem:[#allocation9_spill]] }
  0x55   : > { %1293 = vmatpush.bf16.msra.mxu3 %v4108_v6  ;;  %v4081_v17 = vld [vmem:[%s4680_s16 + $0x20] sm:$0xff]  ;;  %v4080_v22 = vld [vmem:[%s4680_s16 + $0x18] sm:$0xff]  ;;  %v4079_v27 = vld [vmem:[%s4680_s16 + $0x10] sm:$0xff] }
  0x56   : > { %1111 = vmatpush.bf16.msra.mxu0 %v4083_v7  ;;  %v4089_v18 = vld [vmem:[%s4680_s16 + $0x60] sm:$0xff]  ;;  %v4088_v23 = vld [vmem:[%s4680_s16 + $0x58] sm:$0xff]  ;;  %v4087_v28 = vld [vmem:[%s4680_s16 + $0x50] sm:$0xff] }
  0x57   : > { %v4751_v1 = vld [vmem:[#allocation2] sm:$0xff]  ;;  %1172 = vmatpush.bf16.msra.mxu1 %v4091_v8  ;;  %v4096_v25 = vld [vmem:[%s4680_s16 + $0x98] sm:$0xff]  ;;  %v4095_v30 = vld [vmem:[%s4680_s16 + $0x90] sm:$0xff]  ;;  %s5242_s1 = scalar_lea.vmem %s5241_s15, %s4663_s2 }
  0x58   : > { %946 = vadd.xlane.f32.xlu0 %v4751_v1  ;;  %v4344_v11 = vpop.eup %4343  ;;  %1233 = vmatpush.bf16.msra.mxu2 %v4099_v9  ;;  %v4097_v20 = vld [vmem:[%s4680_s16 + $0xa0] sm:$0xff]  ;;  %v4104_v26 = vld [vmem:[%s4680_s16 + $0xd8] sm:$0xff]  ;;  %v4103_v31 = vld [vmem:[%s4680_s16 + $0xd0] sm:$0xff] }
  0x59   : > { %v949_v14 = vmul.f32 128.0, %v4344_v11  ;;  %1294 = vmatpush.bf16.msra.mxu3 %v4107_v10  ;;  %v4105_v21 = vld [vmem:[%s4680_s16 + $0xe0] sm:$0xff]  ;;  %vm953_vm0 = vweird.f32 %v4344_v11  ;;  %v4078_v32 = vld [vmem:[%s4680_s16 + $0x8] sm:$0xff]  ;;  %v4116_v45 = vld [vmem:[%s4685_s29 + $0x38] sm:$0xff]  ;;  %s5247_s6 = scalar_lea.vmem %s5246_s23, %s4663_s2 }
  0x5a   : > { %1112 = vmatpush.bf16.msra.mxu0 %v4082_v12  ;;  %v4086_v33 = vld [vmem:[%s4680_s16 + $0x48] sm:$0xff]  ;;  %v4077_v41 = vld [vmem:[%s4680_s16] sm:$0xff]  ;;  %v4124_v46 = vld [vmem:[%s4685_s29 + $0x78] sm:$0xff]  ;;  %p4034_p1 = scmp.ne.s32.totalorder %s5249_s9, 1 }
  0x5b   : > { %1173 = vmatpush.bf16.msra.mxu1 %v4090_v13  ;;  %v950_v19 = vsub.f32 1.0, %v949_v14  ;;  %v4094_v35 = vld [vmem:[%s4680_s16 + $0x88] sm:$0xff]  ;;  %v4085_v42 = vld [vmem:[%s4680_s16 + $0x40] sm:$0xff]  ;;  %v4132_v47 = vld [vmem:[%s4685_s29 + $0xb8] sm:$0xff]  ;;  %s5252_s25 = sld [smem:[#allocation35_spill]] (!%p4034_p1) }
  0x5c   : > { %1234 = vmatpush.bf16.msra.mxu2 %v4098_v15  ;;  %v4102_v36 = vld [vmem:[%s4680_s16 + $0xc8] sm:$0xff]  ;;  %v4093_v43 = vld [vmem:[%s4680_s16 + $0x80] sm:$0xff]  ;;  %v4140_v48 = vld [vmem:[%s4685_s29 + $0xf8] sm:$0xff] }
  0x5d   : > { %1295 = vmatpush.bf16.msra.mxu3 %v4106_v16  ;;  %v951_v24 = vmul.f32 %v4344_v11, %v950_v19  ;;  %v4101_v44 = vld [vmem:[%s4680_s16 + $0xc0] sm:$0xff]  ;;  %v4115_v49 = vld [vmem:[%s4685_s29 + $0x30] sm:$0xff]  ;;  %v4114_v53 = vld [vmem:[%s4685_s29 + $0x28] sm:$0xff]  ;;  %s5239_s16 = sld [smem:[#allocation22_spill]] }
  0x5e   : > { %1113 = vmatpush.bf16.msra.mxu0 %v4081_v17  ;;  %v4123_v50 = vld [vmem:[%s4685_s29 + $0x70] sm:$0xff]  ;;  %v4122_v54 = vld [vmem:[%s4685_s29 + $0x68] sm:$0xff]  ;;  %v4113_v57 = vld [vmem:[%s4685_s29 + $0x20] sm:$0xff] }
  0x5f   : > { %1174 = vmatpush.bf16.msra.mxu1 %v4089_v18  ;;  %v952_v29 = vadd.f32 %v4344_v11, %v951_v24  ;;  %v4131_v51 = vld [vmem:[%s4685_s29 + $0xb0] sm:$0xff]  ;;  %v4130_v55 = vld [vmem:[%s4685_s29 + $0xa8] sm:$0xff]  ;;  %v4121_v58 = vld [vmem:[%s4685_s29 + $0x60] sm:$0xff] }
  0x60   : > { %1235 = vmatpush.bf16.msra.mxu2 %v4097_v20  ;;  %v4139_v52 = vld [vmem:[%s4685_s29 + $0xf0] sm:$0xff]  ;;  %v4138_v56 = vld [vmem:[%s4685_s29 + $0xe8] sm:$0xff]  ;;  %v4129_v59 = vld [vmem:[%s4685_s29 + $0xa0] sm:$0xff] }
  0x61   : > { %1296 = vmatpush.bf16.msra.mxu3 %v4105_v21  ;;  %v4780_v34 = vsel %vm953_vm0, %v4344_v11, %v952_v29  ;;  %v4137_v60 = vld [vmem:[%s4685_s29 + $0xe0] sm:$0xff]  ;;  %v4112_v61 = vld [vmem:[%s4685_s29 + $0x18] sm:$0xff]  ;;  %v4111_v2 = vld [vmem:[%s4685_s29 + $0x10] sm:$0xff] }
  0x62   : > { %1114 = vmatpush.bf16.msra.mxu0 %v4080_v22  ;;  %v4120_v62 = vld [vmem:[%s4685_s29 + $0x58] sm:$0xff]  ;;  %v4119_v3 = vld [vmem:[%s4685_s29 + $0x50] sm:$0xff]  ;;  %v4110_v6 = vld [vmem:[%s4685_s29 + $0x8] sm:$0xff] }
  0x63   : > { %1175 = vmatpush.bf16.msra.mxu1 %v4088_v23  ;;  %v4128_v63 = vld [vmem:[%s4685_s29 + $0x98] sm:$0xff]  ;;  %v4127_v4 = vld [vmem:[%s4685_s29 + $0x90] sm:$0xff]  ;;  %v4118_v7 = vld [vmem:[%s4685_s29 + $0x48] sm:$0xff]  ;;  %s5240_s18 = scalar_lea.vmem %s5239_s16, %s4663_s2  ;;  %s5250_s16 = sld [smem:[#allocation36_spill]] (!%p4034_p1) }
  0x64   : > { %1236 = vmatpush.bf16.msra.mxu2 %v4096_v25  ;;  %v4136_v0 = vld [vmem:[%s4685_s29 + $0xd8] sm:$0xff]  ;;  %v4135_v5 = vld [vmem:[%s4685_s29 + $0xd0] sm:$0xff]  ;;  %v4126_v8 = vld [vmem:[%s4685_s29 + $0x88] sm:$0xff] }
  0x65   : > { %1297 = vmatpush.bf16.msra.mxu3 %v4104_v26  ;;  %v4134_v9 = vld [vmem:[%s4685_s29 + $0xc8] sm:$0xff]  ;;  %v4109_v10 = vld [vmem:[%s4685_s29] sm:$0xff] }
  0x66   : > { %1115 = vmatpush.bf16.msra.mxu0 %v4079_v27  ;;  %v4117_v11 = vld [vmem:[%s4685_s29 + $0x40] sm:$0xff] }
  0x67   : > { %1176 = vmatpush.bf16.msra.mxu1 %v4087_v28  ;;  %v4125_v12 = vld [vmem:[%s4685_s29 + $0x80] sm:$0xff] }
  0x68   : > { %1237 = vmatpush.bf16.msra.mxu2 %v4095_v30  ;;  %v4133_v13 = vld [vmem:[%s4685_s29 + $0xc0] sm:$0xff]  ;;  %v4148_v30 = vld [vmem:[%s4690_s30 + $0x38] sm:$0xff] }
  0x69   : > { %1298 = vmatpush.bf16.msra.mxu3 %v4103_v31  ;;  %v4325_v23 = vld [vmem:[%s5240_s18] ss:$0 sm:$0xff]  ;;  %v4156_v31 = vld [vmem:[%s4690_s30 + $0x78] sm:$0xff] }
  0x6a   : > { %1116 = vmatpush.bf16.msra.mxu0 %v4078_v32  ;;  %v4326_v25 = vld [vmem:[%s5242_s1] ss:$0 sm:$0xff]  ;;  %v4164_v32 = vld [vmem:[%s4690_s30 + $0xb8] sm:$0xff] }
  0x6b   : > { %1177 = vmatpush.bf16.msra.mxu1 %v4086_v33  ;;  %v4172_v33 = vld [vmem:[%s4690_s30 + $0xf8] sm:$0xff] }
  0x6c   : > { %1238 = vmatpush.bf16.msra.mxu2 %v4094_v35  ;;  %v4147_v35 = vld [vmem:[%s4690_s30 + $0x30] sm:$0xff] }
  0x6d   : > { %1299 = vmatpush.bf16.msra.mxu3 %v4102_v36  ;;  %v4155_v36 = vld [vmem:[%s4690_s30 + $0x70] sm:$0xff] }
  0x6e   : > { %1117 = vmatpush.bf16.msra.mxu0 %v4077_v41  ;;  %v4162_v41 = vld [vmem:[%s4690_s30 + $0xa8] sm:$0xff] }
  0x6f   : > { %1178 = vmatpush.bf16.msra.mxu1 %v4085_v42  ;;  %v4170_v42 = vld [vmem:[%s4690_s30 + $0xe8] sm:$0xff] }
  0x70   : > { %1239 = vmatpush.bf16.msra.mxu2 %v4093_v43  ;;  %v4145_v43 = vld [vmem:[%s4690_s30 + $0x20] sm:$0xff] }
  0x71   : > { %1300 = vmatpush.bf16.msra.mxu3 %v4101_v44  ;;  %v4153_v44 = vld [vmem:[%s4690_s30 + $0x60] sm:$0xff] }
  0x72   : > { %1434 = vmatpush.bf16.msrb.mxu0 %v4116_v45  ;;  %v4161_v45 = vld [vmem:[%s4690_s30 + $0xa0] sm:$0xff] }
  0x73   : > { %1495 = vmatpush.bf16.msrb.mxu1 %v4124_v46  ;;  %v4169_v46 = vld [vmem:[%s4690_s30 + $0xe0] sm:$0xff] }
  0x74   : > { %1556 = vmatpush.bf16.msrb.mxu2 %v4132_v47  ;;  %v4144_v47 = vld [vmem:[%s4690_s30 + $0x18] sm:$0xff] }
  0x75   : > { %1617 = vmatpush.bf16.msrb.mxu3 %v4140_v48  ;;  %v4152_v48 = vld [vmem:[%s4690_s30 + $0x58] sm:$0xff] }
  0x76   : > { %1435 = vmatpush.bf16.msrb.mxu0 %v4115_v49  ;;  %v4160_v49 = vld [vmem:[%s4690_s30 + $0x98] sm:$0xff] }
  0x77   : > { %1496 = vmatpush.bf16.msrb.mxu1 %v4123_v50  ;;  %v4168_v50 = vld [vmem:[%s4690_s30 + $0xd8] sm:$0xff] }
  0x78   : > { %1557 = vmatpush.bf16.msrb.mxu2 %v4131_v51  ;;  %v4143_v51 = vld [vmem:[%s4690_s30 + $0x10] sm:$0xff] }
  0x79   : > { %1618 = vmatpush.bf16.msrb.mxu3 %v4139_v52  ;;  %v4151_v52 = vld [vmem:[%s4690_s30 + $0x50] sm:$0xff] }
  0x7a   : > { %1436 = vmatpush.bf16.msrb.mxu0 %v4114_v53  ;;  %v4159_v53 = vld [vmem:[%s4690_s30 + $0x90] sm:$0xff] }
  0x7b   : > { %1497 = vmatpush.bf16.msrb.mxu1 %v4122_v54  ;;  %v4167_v54 = vld [vmem:[%s4690_s30 + $0xd0] sm:$0xff] }
  0x7c   : > { %1558 = vmatpush.bf16.msrb.mxu2 %v4130_v55  ;;  %v4142_v55 = vld [vmem:[%s4690_s30 + $0x8] sm:$0xff] }
  0x7d   : > { %1619 = vmatpush.bf16.msrb.mxu3 %v4138_v56  ;;  %v4150_v56 = vld [vmem:[%s4690_s30 + $0x48] sm:$0xff] }
  0x7e   : > { %1437 = vmatpush.bf16.msrb.mxu0 %v4113_v57  ;;  %v4158_v57 = vld [vmem:[%s4690_s30 + $0x88] sm:$0xff] }
  0x7f   : > { %1498 = vmatpush.bf16.msrb.mxu1 %v4121_v58  ;;  %v4166_v58 = vld [vmem:[%s4690_s30 + $0xc8] sm:$0xff] }
  0x80   : > { %1559 = vmatpush.bf16.msrb.mxu2 %v4129_v59  ;;  %v4141_v59 = vld [vmem:[%s4690_s30] sm:$0xff] }
  0x81   : > { %1620 = vmatpush.bf16.msrb.mxu3 %v4137_v60  ;;  %v4149_v60 = vld [vmem:[%s4690_s30 + $0x40] sm:$0xff] }
  0x82   : > { %1438 = vmatpush.bf16.msrb.mxu0 %v4112_v61  ;;  %v4157_v61 = vld [vmem:[%s4690_s30 + $0x80] sm:$0xff] }
  0x83   : > { %1499 = vmatpush.bf16.msrb.mxu1 %v4120_v62  ;;  %v4165_v62 = vld [vmem:[%s4690_s30 + $0xc0] sm:$0xff] }
  0x84   : > { %1560 = vmatpush.bf16.msrb.mxu2 %v4128_v63 }
  0x85   : > { %1621 = vmatpush.bf16.msrb.mxu3 %v4136_v0 }
  0x86   : > { %1439 = vmatpush.bf16.msrb.mxu0 %v4111_v2 }
  0x87   : > { %1500 = vmatpush.bf16.msrb.mxu1 %v4119_v3 }
  0x88   : > { %1561 = vmatpush.bf16.msrb.mxu2 %v4127_v4 }
  0x89   : > { %1622 = vmatpush.bf16.msrb.mxu3 %v4135_v5 }
  0x8a   : > { %1440 = vmatpush.bf16.msrb.mxu0 %v4110_v6  ;;  %v4331_v6 = vld [vmem:[%s4705_s27] ss:$0 sm:$0xff] }
  0x8b   : > { %1501 = vmatpush.bf16.msrb.mxu1 %v4118_v7  ;;  %v4332_v7 = vld [vmem:[%s4705_s27 + $0x1] ss:$0 sm:$0xff] }
  0x8c   : > { %1562 = vmatpush.bf16.msrb.mxu2 %v4126_v8 }
  0x8d   : > { %1623 = vmatpush.bf16.msrb.mxu3 %v4134_v9 }
  0x8e   : > { %1441 = vmatpush.bf16.msrb.mxu0 %v4109_v10 }
  0x8f   : > { %1502 = vmatpush.bf16.msrb.mxu1 %v4117_v11 }
  0x90   : > { %1563 = vmatpush.bf16.msrb.mxu2 %v4125_v12 }
  0x91   : > { %1624 = vmatpush.bf16.msrb.mxu3 %v4133_v13 }
  0xcb   : > { %v947_v37 = vpop.xlane.xlu0 %946 }
  0xcc   : > { %v955_v38 = vmul.f32 %v4780_v34, %v947_v37  ;;  %v4163_v37 = vld [vmem:[%s4690_s30 + $0xb0] sm:$0xff] }
  0xce   : > { %v4786_v39 = vsub.f32 %v4751_v1, %v955_v38  ;;  %v4171_v38 = vld [vmem:[%s4690_s30 + $0xf0] sm:$0xff] }
  0xd0   : > { %v957_v40 = vmul.f32 %v4786_v39, %v4786_v39 }
  0xd2   : > { %958 = vadd.xlane.f32.xlu0 %v957_v40  ;;  %v4154_v40 = vld [vmem:[%s4690_s30 + $0x68] sm:$0xff] }
 0x145   : > { %v959_v14 = vpop.xlane.xlu0 %958 }
 0x146   : > { %v960_v15 = vmul.f32 %v959_v14, %v4780_v34  ;;  %v4327_v14 = vld [vmem:[%s5243_s26] ss:$0 sm:$0xff] }
 0x148   : > { %v961_v16 = vadd.f32 1e-05, %v960_v15 }
 0x14a   : > { %4345 = vrsqrt.f32 %v961_v16  ;;  %vm968_vm2 = vweird.f32 %v961_v16 }
 0x150   : > { %v4346_v17 = vpop.eup %4345 }
 0x151   : > { %v963_v18 = vmul.f32 %v4346_v17, %v961_v16  ;;  %vm969_vm1 = vweird.f32 %v4346_v17 }
 0x152   : > { %vm970_vm3 = vmor %vm968_vm2, %vm969_vm1 }
 0x153   : > { %v964_v19 = vmul.f32 %v4346_v17, %v963_v18  ;;  %v4333_v18 = vld [vmem:[%s4705_s27 + $0x2] ss:$0 sm:$0xff] }
 0x155   : > { %v965_v20 = vmul.f32 0.5, %v964_v19  ;;  %v4334_v19 = vld [vmem:[%s4705_s27 + $0x3] ss:$0 sm:$0xff] }
 0x157   : > { %v966_v21 = vsub.f32 1.5, %v965_v20 }
 0x159   : > { %v967_v22 = vmul.f32 %v4346_v17, %v966_v21 }
 0x15b   : > { %v971_v24 = vsel %vm970_vm3, %v4346_v17, %v967_v22  ;;  %v4328_v17 = vld [vmem:[%s5243_s26 + $0x1] ss:$0 sm:$0xff] }
 0x15c   : > { %v972_v26 = vmul.f32 %v971_v24, %v4786_v39  ;;  %v4146_v39 = vld [vmem:[%s4690_s30 + $0x28] sm:$0xff]  ;;  %s5244_s30 = sld [smem:[#allocation20_spill]] }
 0x15e   : > { %v976_v27 = vmul.f32 %v4325_v23, %v972_v26 }
 0x160   : > { %v980_v28 = vadd.f32 %v4326_v25, %v976_v27 }
 0x162   : > { %v4838_v29 = vpack.c.bf16 %v980_v28, %v980_v28 }
 0x164   : > { %1118 = vmatmul.bf16.vlgmr.msra.gmra.mxu0 %v4838_v29  ;;  %1179 = vmatmul.bf16.vlgmr.msra.gmra.mxu1 %v4838_v29 }
 0x165   : > { %1240 = vmatmul.bf16.vlgmr.msra.gmra.mxu2 %v4838_v29  ;;  %1301 = vmatmul.bf16.vlgmr.msra.gmra.mxu3 %v4838_v29 }
 0x166   : > { %1758 = vmatpush.bf16.msra.mxu0 %v4148_v30  ;;  %1819 = vmatpush.bf16.msra.mxu1 %v4156_v31  ;;  %v4329_v30 = vld [vmem:[%s5243_s26 + $0x2] ss:$0 sm:$0xff]  ;;  %v4330_v31 = vld [vmem:[%s5243_s26 + $0x3] ss:$0 sm:$0xff] }
 0x167   : > { %1880 = vmatpush.bf16.msra.mxu2 %v4164_v32  ;;  %1941 = vmatpush.bf16.msra.mxu3 %v4172_v33 }
 0x16a   : > { %1759 = vmatpush.bf16.msra.mxu0 %v4147_v35  ;;  %1820 = vmatpush.bf16.msra.mxu1 %v4155_v36 }
 0x16b   : > { %1881 = vmatpush.bf16.msra.mxu2 %v4163_v37  ;;  %1942 = vmatpush.bf16.msra.mxu3 %v4171_v38 }
 0x16e   : > { %1760 = vmatpush.bf16.msra.mxu0 %v4146_v39  ;;  %1821 = vmatpush.bf16.msra.mxu1 %v4154_v40 }
 0x16f   : > { %1882 = vmatpush.bf16.msra.mxu2 %v4162_v41  ;;  %1943 = vmatpush.bf16.msra.mxu3 %v4170_v42  ;;  %v4335_v41 = vld [vmem:[%s5244_s30] ss:$0 sm:$0xff]  ;;  %v4336_v42 = vld [vmem:[%s5244_s30 + $0x1] ss:$0 sm:$0xff] }
 0x172   : > { %1761 = vmatpush.bf16.msra.mxu0 %v4145_v43  ;;  %1822 = vmatpush.bf16.msra.mxu1 %v4153_v44 }
 0x173   : > { %1883 = vmatpush.bf16.msra.mxu2 %v4161_v45  ;;  %1944 = vmatpush.bf16.msra.mxu3 %v4169_v46 }
 0x174   : > { %1442 = vmatmul.bf16.vlgmr.msrb.gmra.mxu0 %v4838_v29  ;;  %1503 = vmatmul.bf16.vlgmr.msrb.gmra.mxu1 %v4838_v29 }
 0x175   : > { %1564 = vmatmul.bf16.vlgmr.msrb.gmra.mxu2 %v4838_v29  ;;  %1625 = vmatmul.bf16.vlgmr.msrb.gmra.mxu3 %v4838_v29 }
 0x176   : > { %1762 = vmatpush.bf16.msra.mxu0 %v4144_v47  ;;  %1823 = vmatpush.bf16.msra.mxu1 %v4152_v48 }
 0x177   : > { %1884 = vmatpush.bf16.msra.mxu2 %v4160_v49  ;;  %1945 = vmatpush.bf16.msra.mxu3 %v4168_v50 }
 0x17a   : > { %1763 = vmatpush.bf16.msra.mxu0 %v4143_v51  ;;  %1824 = vmatpush.bf16.msra.mxu1 %v4151_v52 }
 0x17b   : > { %1885 = vmatpush.bf16.msra.mxu2 %v4159_v53  ;;  %1946 = vmatpush.bf16.msra.mxu3 %v4167_v54  ;;  %v4337_v53 = vld [vmem:[%s5244_s30 + $0x2] ss:$0 sm:$0xff]  ;;  %v4338_v54 = vld [vmem:[%s5244_s30 + $0x3] ss:$0 sm:$0xff] }
 0x17e   : > { %1764 = vmatpush.bf16.msra.mxu0 %v4142_v55  ;;  %1825 = vmatpush.bf16.msra.mxu1 %v4150_v56 }
 0x17f   : > { %1886 = vmatpush.bf16.msra.mxu2 %v4158_v57  ;;  %1947 = vmatpush.bf16.msra.mxu3 %v4166_v58 }
 0x182   : > { %1765 = vmatpush.bf16.msra.mxu0 %v4141_v59  ;;  %1826 = vmatpush.bf16.msra.mxu1 %v4149_v60 }
 0x183   : > { %1887 = vmatpush.bf16.msra.mxu2 %v4157_v61  ;;  %1948 = vmatpush.bf16.msra.mxu3 %v4165_v62 }
 0x185   : > { %1766 = vmatmul.bf16.vlgmr.msra.gmra.mxu0 %v4838_v29  ;;  %1827 = vmatmul.bf16.vlgmr.msra.gmra.mxu1 %v4838_v29 }
 0x186   : > { %1888 = vmatmul.bf16.vlgmr.msra.gmra.mxu2 %v4838_v29  ;;  %1949 = vmatmul.bf16.vlgmr.msra.gmra.mxu3 %v4838_v29 }
 0x1e1   : > { %v1119_v63 = vpop.f32.mrf.mxu0  ;;  %v1180_v0 = vpop.f32.mrf.mxu1 }
 0x1e2   : > { %v1120_v24 = vadd.f32 %v4327_v14, %v1119_v63  ;;  %v1181_v25 = vadd.f32 %v4328_v17, %v1180_v0 }
 0x1e4   : > { %v1954_v35 = vpack.c.bf16 %v1120_v24, %v1120_v24  ;;  %v1955_v36 = vpack.c.bf16 %v1181_v25, %v1181_v25 }
 0x1e8   : > { %v1241_v2 = vpop.f32.mrf.mxu2  ;;  %v1302_v3 = vpop.f32.mrf.mxu3 }
 0x1e9   : > { %v1121_v4 = vpop.f32.mrf.mxu0  ;;  %v1182_v5 = vpop.f32.mrf.mxu1  ;;  %v1242_v39 = vadd.f32 %v4329_v30, %v1241_v2  ;;  %v1303_v40 = vadd.f32 %v4330_v31, %v1302_v3 }
 0x1eb   : > { %v1956_v47 = vpack.c.bf16 %v1242_v39, %v1242_v39  ;;  %v1957_v48 = vpack.c.bf16 %v1303_v40, %v1303_v40  ;;  %v4174_v40 = vld [vmem:[%s4717_s3 + $0x8] sm:$0xff] }
 0x1f0   : > { %v1243_v8 = vpop.f32.mrf.mxu2  ;;  %v1304_v9 = vpop.f32.mrf.mxu3 }
 0x1f1   : > { %v1443_v10 = vpop.f32.mrf.mxu0  ;;  %v1504_v11 = vpop.f32.mrf.mxu1 }
 0x1f2   : > { %v1444_v12 = vadd.f32 %v4331_v6, %v1443_v10  ;;  %v1505_v13 = vadd.f32 %v4332_v7, %v1504_v11 }
 0x1f4   : > { %v1958_v15 = vpack.c.bf16 %v1444_v12, %v1444_v12  ;;  %v1959_v16 = vpack.c.bf16 %v1505_v13, %v1505_v13 }
 0x1f6   : > { %v1967_v20 = vsel %vm1962_vm4, %v1958_v15, 0  ;;  %v1986_v21 = vsel %vm1962_vm4, %v1959_v16, 0 }
 0x1f7   : > { %1976 = vmatpush.bf16.xpose.msrb.mxu0 %v1967_v20  ;;  %1995 = vmatpush.bf16.xpose.msrb.mxu1 %v1986_v21 }
 0x1f8   : > { %v1565_v22 = vpop.f32.mrf.mxu2  ;;  %v1626_v23 = vpop.f32.mrf.mxu3 }
 0x1f9   : > { %v1566_v26 = vadd.f32 %v4333_v18, %v1565_v22  ;;  %v1627_v27 = vadd.f32 %v4334_v19, %v1626_v23  ;;  %v1445_v28 = vpop.f32.mrf.mxu0  ;;  %v1506_v29 = vpop.f32.mrf.mxu1 }
 0x1fb   : > { %v1960_v32 = vpack.c.bf16 %v1566_v26, %v1566_v26  ;;  %v1961_v33 = vpack.c.bf16 %v1627_v27, %v1627_v27 }
 0x1fd   : > { %v2005_v37 = vsel %vm1962_vm4, %v1960_v32, 0  ;;  %v2024_v38 = vsel %vm1962_vm4, %v1961_v33, 0 }
 0x1fe   : > { %2014 = vmatpush.bf16.xpose.msrb.mxu2 %v2005_v37  ;;  %2033 = vmatpush.bf16.xpose.msrb.mxu3 %v2024_v38 }
 0x1ff   : > { %3734 = vmatmul.msk.bf16.vlgmr.msrb.gmra.mxu0 %vm1962_vm4, %v1954_v35  ;;  %3735 = vmatmul.msk.bf16.vlgmr.msrb.gmra.mxu1 %vm1962_vm4, %v1955_v36 }
 0x200   : > { %v1567_v43 = vpop.f32.mrf.mxu2  ;;  %v1628_v44 = vpop.f32.mrf.mxu3 }
 0x202   : > { %v1767_v45 = vpop.f32.mrf.mxu0  ;;  %v1828_v46 = vpop.f32.mrf.mxu1 }
 0x203   : > { %v1768_v49 = vadd.f32 %v4335_v41, %v1767_v45  ;;  %v1829_v50 = vadd.f32 %v4336_v42, %v1828_v46 }
 0x205   : > { %v2088_v51 = vpack.c.bf16 %v1768_v49, %v1768_v49  ;;  %v2089_v52 = vpack.c.bf16 %v1829_v50, %v1829_v50  ;;  %3736 = vmatmul.msk.bf16.vlgmr.msrb.gmra.mxu2 %vm1962_vm4, %v1956_v47  ;;  %3737 = vmatmul.msk.bf16.vlgmr.msrb.gmra.mxu3 %vm1962_vm4, %v1957_v48 }
 0x207   : > { %v2097_v55 = vsel %vm2095_vm5, %v2088_v51, 0  ;;  %v2116_v56 = vsel %vm2095_vm5, %v2089_v52, 0 }
 0x208   : > { %2106 = vmatpush.bf16.msra.mxu0 %v2097_v55  ;;  %2125 = vmatpush.bf16.msra.mxu1 %v2116_v56  ;;  %v4173_v56 = vld [vmem:[%s4717_s3] sm:$0xff] }
 0x209   : > { %v1889_v57 = vpop.f32.mrf.mxu2  ;;  %v1950_v58 = vpop.f32.mrf.mxu3 }
 0x20a   : > { %v1890_v59 = vadd.f32 %v4337_v53, %v1889_v57  ;;  %v1951_v60 = vadd.f32 %v4338_v54, %v1950_v58  ;;  %v1769_v61 = vpop.f32.mrf.mxu0  ;;  %v1830_v62 = vpop.f32.mrf.mxu1  ;;  %v4178_v57 = vld [vmem:[%s4717_s3 + $0x28] sm:$0xff]  ;;  %v4176_v58 = vld [vmem:[%s4717_s3 + $0x18] sm:$0xff] }
 0x20b   : > { %v4180_v61 = vld [vmem:[%s4717_s3 + $0x38] sm:$0xff]  ;;  %v4179_v62 = vld [vmem:[%s4717_s3 + $0x30] sm:$0xff] }
 0x20c   : > { %v2090_v63 = vpack.c.bf16 %v1890_v59, %v1890_v59  ;;  %v2091_v0 = vpack.c.bf16 %v1951_v60, %v1951_v60  ;;  %2210 = vmatpush.bf16.msrb.mxu0 %v4174_v40  ;;  %2238 = vmatpush.bf16.msrb.mxu1 %v4176_v58  ;;  %v4177_v59 = vld [vmem:[%s4717_s3 + $0x20] sm:$0xff]  ;;  %v4175_v60 = vld [vmem:[%s4717_s3 + $0x10] sm:$0xff] }
 0x20d   : > { %v3862_v58 = vld [vmem:[%s4734_s22 + $0xb0] sm:$0xf0] }
 0x20e   : > { %v2135_v2 = vsel %vm2095_vm5, %v2090_v63, 0  ;;  %v2154_v3 = vsel %vm2095_vm5, %v2091_v0, 0 }
 0x20f   : > { %2144 = vmatpush.bf16.msra.mxu2 %v2135_v2  ;;  %2163 = vmatpush.bf16.msra.mxu3 %v2154_v3 }
 0x210   : > { %2211 = vmatpush.bf16.msrb.mxu0 %v4173_v56  ;;  %2239 = vmatpush.bf16.msrb.mxu1 %v4175_v60  ;;  %v4201_v56 = vld [vmem:[%s4734_s22 + $0xa4] sm:$0xf]  ;;  %v4204_v60 = vld [vmem:[%s4734_s22 + $0xb4] sm:$0xf0] }
 0x211   : > { %v1891_v4 = vpop.f32.mrf.mxu2  ;;  %v1952_v5 = vpop.f32.mrf.mxu3 }
 0x213   : > { %2266 = vmatpush.bf16.msrb.mxu2 %v4178_v57  ;;  %2294 = vmatpush.bf16.msrb.mxu3 %v4180_v61  ;;  %v3865_v61 = vor.u32 %v4201_v56, %v3862_v58  ;;  %v3782_v56 = vld [vmem:[%s4734_s22 + $0x10] sm:$0xf0] }
 0x217   : > { %2267 = vmatpush.bf16.msrb.mxu2 %v4177_v59  ;;  %2295 = vmatpush.bf16.msrb.mxu3 %v4179_v62  ;;  %v3868_v59 = vld [vmem:[%s4734_s22 + $0xa8] sm:$0xf] }
 0x218   : > { %v3869_v62 = vor.u32 %v4204_v60, %v3868_v59  ;;  %v3788_v59 = vld [vmem:[%s4734_s22 + $0x8] sm:$0xf]  ;;  %v4184_v60 = vld [vmem:[%s4734_s22 + $0x14] sm:$0xf0] }
 0x27c   : > { %v1978_v6 = vpop.f32.mrf.mxu0  ;;  %v1997_v7 = vpop.f32.mrf.mxu1 }
 0x27d   : > { %v2040_v8 = vsel %vm2039_vm6, %v1978_v6, -inf  ;;  %v2043_v11 = vsel %vm2039_vm6, %v1997_v7, -inf }
 0x27e   : > { %2041 = vmax.xlane.f32.xlu2 %v2040_v8 }
 0x284   : > { %v1980_v9 = vpop.f32.mrf.mxu0  ;;  %v1999_v10 = vpop.f32.mrf.mxu1 }
 0x286   : > { %2044 = vmax.xlane.f32.xlu2 %v2043_v11 }
 0x288   : > { %v2016_v12 = vpop.f32.mrf.mxu2  ;;  %v2035_v13 = vpop.f32.mrf.mxu3 }
 0x289   : > { %v2046_v14 = vsel %vm2039_vm6, %v2016_v12, -inf  ;;  %v2049_v17 = vsel %vm2039_vm6, %v2035_v13, -inf }
 0x28a   : > { %2047 = vmax.xlane.f32.xlu1 %v2046_v14 }
 0x290   : > { %v2018_v15 = vpop.f32.mrf.mxu2  ;;  %v2037_v16 = vpop.f32.mrf.mxu3 }
 0x292   : > { %2050 = vmax.xlane.f32.xlu1 %v2049_v17 }
 0x2f1   : > { %v2042_v18 = vpop.xlane.xlu2 %2041 }
 0x2f2   : > { %v2052_v19 = vsub.f32 %v1978_v6, %v2042_v18 }
 0x2f4   : > { %v2056_v20 = vmul.f32 1.442695, %v2052_v19  ;;  %v4339_v19 = vld [vmem:[%s5245_s24] ss:$0 sm:$0xff] }
 0x2f6   : > { %4347 = vpow2.f32 %v2056_v20 }
 0x2f9   : > { %v2045_v22 = vpop.xlane.xlu2 %2044 }
 0x2fa   : > { %v2053_v26 = vsub.f32 %v1997_v7, %v2045_v22 }
 0x2fc   : > { %v4348_v21 = vpop.eup %4347  ;;  %v2058_v28 = vmul.f32 1.442695, %v2053_v26  ;;  %v3892_v26 = vld [vmem:[%s4734_s22 + $0xe0] sm:$0xf] }
 0x2fd   : > { %v2048_v23 = vpop.xlane.xlu1 %2047  ;;  %v2064_v24 = vsel %vm2039_vm6, %v4348_v21, 0.0 }
 0x2fe   : > { %v2054_v25 = vsub.f32 %v2016_v12, %v2048_v23  ;;  %2065 = vadd.xlane.f32.xlu2 %v2064_v24 }
 0x300   : > { %v2060_v27 = vmul.f32 1.442695, %v2054_v25 }
 0x302   : > { %4349 = vpow2.f32 %v2060_v27  ;;  %v4211_v27 = vld [vmem:[%s4734_s22 + $0xec] sm:$0xf0] }
 0x303   : > { %4351 = vpow2.f32 %v2058_v28  ;;  %v4209_v28 = vld [vmem:[%s4734_s22 + $0xe4] sm:$0xf] }
 0x305   : > { %v2051_v29 = vpop.xlane.xlu1 %2050 }
 0x306   : > { %v2055_v30 = vsub.f32 %v2035_v13, %v2051_v29  ;;  %v3893_v29 = vor.u32 %v4211_v27, %v3892_v26  ;;  %v3838_v26 = vld [vmem:[%s4734_s22 + $0x78] sm:$0xf0] }
 0x308   : > { %v4350_v31 = vpop.eup %4349  ;;  %v2062_v32 = vmul.f32 1.442695, %v2055_v30  ;;  %v3894_v30 = vld [vmem:[%s4734_s22 + $0xf0] sm:$0xf0] }
 0x309   : > { %v2070_v33 = vsel %vm2039_vm6, %v4350_v31, 0.0  ;;  %v4352_v35 = vpop.eup %4351 }
 0x30a   : > { %4353 = vpow2.f32 %v2062_v32  ;;  %2071 = vadd.xlane.f32.xlu0 %v2070_v33  ;;  %v2067_v38 = vsel %vm2039_vm6, %v4352_v35, 0.0  ;;  %v4212_v32 = vld [vmem:[%s4734_s22 + $0xf4] sm:$0xf0]  ;;  %v3897_v33 = vor.u32 %v4209_v28, %v3894_v30  ;;  %v3812_v28 = vld [vmem:[%s4734_s22 + $0x40] sm:$0xf] }
 0x30b   : > { %v4189_v30 = vld [vmem:[%s4734_s22 + $0x44] sm:$0xf] }
 0x310   : > { %v4354_v36 = vpop.eup %4353 }
 0x311   : > { %v2073_v37 = vsel %vm2039_vm6, %v4354_v36, 0.0 }
 0x312   : > { %2074 = vadd.xlane.f32.xlu1 %v2073_v37  ;;  %2068 = vadd.xlane.f32.xlu0 %v2067_v38  ;;  %v3902_v37 = vld [vmem:[%s4734_s22 + $0xf8] sm:$0xf0] }
 0x371   : > { %v2066_v39 = vpop.xlane.xlu2 %2065 }
 0x372   : > { %4355 = vrcp.f32 %v2066_v39 }
 0x378   : > { %v4356_v41 = vpop.eup %4355 }
 0x379   : > { %v2080_v42 = vmul.f32 %v4356_v41, %v4348_v21 }
 0x37b   : > { %v2084_v43 = vpack.c.bf16 %v2080_v42, %v2080_v42  ;;  %v3876_v42 = vld [vmem:[%s4734_s22 + $0xc0] sm:$0xf] }
 0x37d   : > { %v2072_v44 = vpop.xlane.xlu0 %2071  ;;  %3738 = vmatmul.msk.bf16.vlgmr.msra.gmra.mxu0 %vm2039_vm6, %v2084_v43  ;;  %v4207_v43 = vld [vmem:[%s4734_s22 + $0xcc] sm:$0xf0] }
 0x37e   : > { %4357 = vrcp.f32 %v2072_v44  ;;  %2543 = vmatpush.bf16.msra.mxu0 %v3893_v29  ;;  %v4205_v44 = vld [vmem:[%s4734_s22 + $0xc4] sm:$0xf]  ;;  %v4191_v29 = vld [vmem:[%s4734_s22 + $0x4c] sm:$0xf0] }
 0x384   : > { %v4358_v45 = vpop.eup %4357 }
 0x385   : > { %v2082_v46 = vmul.f32 %v4358_v45, %v4350_v31  ;;  %v2075_v47 = vpop.xlane.xlu1 %2074  ;;  %v2069_v48 = vpop.xlane.xlu0 %2068  ;;  %v3900_v31 = vld [vmem:[%s4734_s22 + $0xe8] sm:$0xf]  ;;  %v3877_v45 = vor.u32 %v4207_v43, %v3876_v42  ;;  %v4187_v42 = vld [vmem:[%s4734_s22 + $0x2c] sm:$0xf0]  ;;  %v4185_v43 = vld [vmem:[%s4734_s22 + $0x24] sm:$0xf] }
 0x386   : > { %4359 = vrcp.f32 %v2075_v47  ;;  %v3884_v47 = vld [vmem:[%s4734_s22 + $0xc8] sm:$0xf] }
 0x387   : > { %v2086_v49 = vpack.c.bf16 %v2082_v46, %v2082_v46  ;;  %4361 = vrcp.f32 %v2069_v48  ;;  %v3878_v46 = vld [vmem:[%s4734_s22 + $0xd0] sm:$0xf0]  ;;  %v4208_v48 = vld [vmem:[%s4734_s22 + $0xd4] sm:$0xf0]  ;;  %2544 = vmatpush.bf16.msra.mxu0 %v3877_v45 }
 0x388   : > { %v3798_v45 = vld [vmem:[%s4734_s22 + $0x30] sm:$0xf0] }
 0x389   : > { %3740 = vmatmul.msk.bf16.vlgmr.msra.gmra.mxu2 %vm2039_vm6, %v2086_v49  ;;  %v3881_v49 = vor.u32 %v4205_v44, %v3878_v46  ;;  %v3804_v46 = vld [vmem:[%s4734_s22 + $0x28] sm:$0xf] }
 0x38c   : > { %v4360_v50 = vpop.eup %4359 }
 0x38d   : > { %v4362_v51 = vpop.eup %4361  ;;  %v2083_v52 = vmul.f32 %v4360_v50, %v4354_v36  ;;  %v4210_v36 = vld [vmem:[%s4734_s22 + $0xec] sm:$0xf]  ;;  %v3885_v50 = vor.u32 %v4208_v48, %v3884_v47  ;;  %v4188_v47 = vld [vmem:[%s4734_s22 + $0x34] sm:$0xf0]  ;;  %v3801_v48 = vor.u32 %v4185_v43, %v3798_v45  ;;  %v4231_v43 = vld [vmem:[%s4743_s21 + $0x90] sm:$0xff] }
 0x38e   : > { %v2081_v53 = vmul.f32 %v4362_v51, %v4352_v35  ;;  %v3901_v35 = vor.u32 %v4212_v32, %v3900_v31  ;;  %v4206_v51 = vld [vmem:[%s4734_s22 + $0xcc] sm:$0xf]  ;;  %v3813_v31 = vor.u32 %v4191_v29, %v3812_v28  ;;  %v3814_v32 = vld [vmem:[%s4734_s22 + $0x50] sm:$0xf0]  ;;  %v4217_v28 = vld [vmem:[%s4743_s21 + $0x20] sm:$0xff] }
 0x38f   : > { %v2087_v54 = vpack.c.bf16 %v2083_v52, %v2083_v52  ;;  %v3886_v52 = vld [vmem:[%s4734_s22 + $0xd8] sm:$0xf0]  ;;  %v4225_v29 = vld [vmem:[%s4743_s21 + $0x60] sm:$0xff] }
 0x390   : > { %v2085_v55 = vpack.c.bf16 %v2081_v53, %v2081_v53  ;;  %2569 = vmatpush.bf16.msra.mxu2 %v3901_v35  ;;  %v3889_v53 = vor.u32 %v4206_v51, %v3886_v52  ;;  %v4192_v35 = vld [vmem:[%s4734_s22 + $0x54] sm:$0xf0]  ;;  %v3806_v51 = vld [vmem:[%s4734_s22 + $0x38] sm:$0xf0]  ;;  %v3780_v52 = vld [vmem:[%s4734_s22] sm:$0xf] }
 0x391   : > { %3741 = vmatmul.msk.bf16.vlgmr.msra.gmra.mxu3 %vm2039_vm6, %v2087_v54  ;;  %v3860_v54 = vld [vmem:[%s4734_s22 + $0xa0] sm:$0xf] }
 0x392   : > { %3739 = vmatmul.msk.bf16.vlgmr.msra.gmra.mxu1 %vm2039_vm6, %v2085_v55  ;;  %v4203_v55 = vld [vmem:[%s4734_s22 + $0xac] sm:$0xf0]  ;;  %v4213_v45 = vld [vmem:[%s4743_s21] sm:$0xff] }
 0x393   : > { %2556 = vmatpush.bf16.msra.mxu1 %v3897_v33  ;;  %v3861_v57 = vor.u32 %v4203_v55, %v3860_v54  ;;  %v3820_v33 = vld [vmem:[%s4734_s22 + $0x48] sm:$0xf]  ;;  %v4183_v54 = vld [vmem:[%s4734_s22 + $0xc] sm:$0xf0]  ;;  %v4181_v55 = vld [vmem:[%s4734_s22 + $0x4] sm:$0xf] }
 0x394   : > { %2570 = vmatpush.bf16.msra.mxu2 %v3885_v50  ;;  %v4186_v50 = vld [vmem:[%s4734_s22 + $0x2c] sm:$0xf]  ;;  %v3785_v58 = vor.u32 %v4181_v55, %v3782_v56 }
 0x395   : > { %2545 = vmatpush.bf16.msra.mxu0 %v3861_v57  ;;  %v3781_v57 = vor.u32 %v4183_v54, %v3780_v52  ;;  %v4229_v52 = vld [vmem:[%s4743_s21 + $0x80] sm:$0xff] }
 0x397   : > { %2557 = vmatpush.bf16.msra.mxu1 %v3881_v49  ;;  %v3805_v49 = vor.u32 %v4188_v47, %v3804_v46  ;;  %v4221_v46 = vld [vmem:[%s4743_s21 + $0x40] sm:$0xff]  ;;  %v4230_v47 = vld [vmem:[%s4743_s21 + $0x88] sm:$0xff] }
 0x398   : > { %2571 = vmatpush.bf16.msra.mxu2 %v3869_v62  ;;  %v3789_v62 = vor.u32 %v4184_v60, %v3788_v59 }
 0x39b   : > { %2558 = vmatpush.bf16.msra.mxu1 %v3865_v61  ;;  %v4182_v61 = vld [vmem:[%s4734_s22 + $0xc] sm:$0xf] }
 0x3fa   : > { %v2108_v63 = vpop.f32.mrf.mxu0 }
 0x3fb   : > { %v2169_v0 = vpack.c.bf16 %v2108_v63, %v2108_v63  ;;  %v4202_v63 = vld [vmem:[%s4734_s22 + $0xac] sm:$0xf] }
 0x3fd   : > { %3750 = vmatmul.msk.bf16.vlgmr.msrb.gmra.mxu0 %vm1962_vm4, %v2169_v0  ;;  %v3870_v0 = vld [vmem:[%s4734_s22 + $0xb8] sm:$0xf0] }
 0x402   : > { %v2110_v2 = vpop.f32.mrf.mxu0 }
 0x403   : > { %v3873_v2 = vor.u32 %v4202_v63, %v3870_v0  ;;  %v3790_v63 = vld [vmem:[%s4734_s22 + $0x18] sm:$0xf0] }
 0x404   : > { %v3793_v0 = vor.u32 %v4182_v61, %v3790_v63 }
 0x40c   : > { %v2146_v3 = vpop.f32.mrf.mxu2 }
 0x40d   : > { %v2171_v4 = vpack.c.bf16 %v2146_v3, %v2146_v3  ;;  %v3844_v3 = vld [vmem:[%s4734_s22 + $0x80] sm:$0xf] }
 0x40f   : > { %v2127_v5 = vpop.f32.mrf.mxu1  ;;  %3768 = vmatmul.msk.bf16.vlgmr.msrb.gmra.mxu2 %vm1962_vm4, %v2171_v4  ;;  %v4199_v4 = vld [vmem:[%s4734_s22 + $0x8c] sm:$0xf0] }
 0x410   : > { %v2170_v6 = vpack.c.bf16 %v2127_v5, %v2127_v5  ;;  %v4197_v5 = vld [vmem:[%s4734_s22 + $0x84] sm:$0xf] }
 0x412   : > { %3759 = vmatmul.msk.bf16.vlgmr.msrb.gmra.mxu1 %vm1962_vm4, %v2170_v6  ;;  %v3845_v6 = vor.u32 %v4199_v4, %v3844_v3  ;;  %v4220_v3 = vld [vmem:[%s4743_s21 + $0x38] sm:$0xff] }
 0x413   : > { %v4228_v4 = vld [vmem:[%s4743_s21 + $0x78] sm:$0xff] }
 0x414   : > { %v2148_v7 = vpop.f32.mrf.mxu2  ;;  %v2165_v8 = vpop.f32.mrf.mxu3  ;;  %2546 = vmatpush.bf16.msra.mxu0 %v3845_v6 }
 0x415   : > { %v2172_v9 = vpack.c.bf16 %v2165_v8, %v2165_v8  ;;  %v3846_v7 = vld [vmem:[%s4734_s22 + $0x90] sm:$0xf0]  ;;  %v3852_v8 = vld [vmem:[%s4734_s22 + $0x88] sm:$0xf] }
 0x417   : > { %v2129_v10 = vpop.f32.mrf.mxu1  ;;  %3777 = vmatmul.msk.bf16.vlgmr.msrb.gmra.mxu3 %vm1962_vm4, %v2172_v9  ;;  %v4200_v9 = vld [vmem:[%s4734_s22 + $0x94] sm:$0xf0] }
 0x418   : > { %v3849_v10 = vor.u32 %v4197_v5, %v3846_v7 }
 0x41a   : > { %2559 = vmatpush.bf16.msra.mxu1 %v3849_v10 }
 0x41c   : > { %v2167_v11 = vpop.f32.mrf.mxu3 }
 0x41d   : > { %v3853_v11 = vor.u32 %v4200_v9, %v3852_v8 }
 0x41f   : > { %2572 = vmatpush.bf16.msra.mxu2 %v3853_v11 }
 0x47a   : > { %v2213_v12 = vpop.f32.mrf.mxu0 }
 0x482   : > { %v2215_v13 = vpop.f32.mrf.mxu0 }
 0x483   : > { %v3854_v13 = vld [vmem:[%s4734_s22 + $0x98] sm:$0xf0] }
 0x48f   : > { %v2241_v14 = vpop.f32.mrf.mxu1 }
 0x490   : > { %v2301_v16 = vadd.f32 %v2241_v14, %v2213_v12  ;;  %v4198_v12 = vld [vmem:[%s4734_s22 + $0x8c] sm:$0xf] }
 0x491   : > { %v3857_v14 = vor.u32 %v4198_v12, %v3854_v13  ;;  %v4340_v13 = vld [vmem:[%s5247_s6] ss:$0 sm:$0xff] }
 0x492   : > { %v2269_v15 = vpop.f32.mrf.mxu2 }
 0x493   : > { %v2302_v18 = vadd.f32 %v2301_v16, %v2269_v15  ;;  %v3828_v15 = vld [vmem:[%s4734_s22 + $0x60] sm:$0xf]  ;;  %v4195_v16 = vld [vmem:[%s4734_s22 + $0x6c] sm:$0xf0] }
 0x497   : > { %v2243_v17 = vpop.f32.mrf.mxu1 }
 0x498   : > { %v4193_v17 = vld [vmem:[%s4734_s22 + $0x64] sm:$0xf] }
 0x49a   : > { %v2271_v20 = vpop.f32.mrf.mxu2  ;;  %v2297_v21 = vpop.f32.mrf.mxu3 }
 0x49b   : > { %v2303_v22 = vadd.f32 %v2302_v18, %v2297_v21  ;;  %v3829_v18 = vor.u32 %v4195_v16, %v3828_v15  ;;  %v3836_v20 = vld [vmem:[%s4734_s22 + $0x68] sm:$0xf]  ;;  %v4196_v21 = vld [vmem:[%s4734_s22 + $0x74] sm:$0xf0]  ;;  %v4341_v16 = vld [vmem:[%s918_s4] ss:$0 sm:$0xff] }
 0x49c   : > { %s5251_s4 = sld [smem:[#allocation34_spill]] (!%p4034_p1) }
 0x49d   : > { %v2308_v23 = vadd.f32 %v4339_v19, %v2303_v22  ;;  %v3830_v19 = vld [vmem:[%s4734_s22 + $0x70] sm:$0xf0]  ;;  %2547 = vmatpush.bf16.msra.mxu0 %v3829_v18 }
 0x49e   : > { %v3833_v22 = vor.u32 %v4193_v17, %v3830_v19 }
 0x49f   : > { %v4938_v24 = vadd.f32 %v2308_v23, %v4751_v1  ;;  %v3905_v1 = vor.u32 %v4210_v36, %v3902_v37  ;;  %v3837_v23 = vor.u32 %v4196_v21, %v3836_v20  ;;  %v3817_v36 = vor.u32 %v4189_v30, %v3814_v32  ;;  %v4219_v20 = vld [vmem:[%s4743_s21 + $0x30] sm:$0xff]  ;;  %v4234_v30 = vld [vmem:[%s4743_s21 + $0xa8] sm:$0xff]  ;;  %v4216_v32 = vld [vmem:[%s4743_s21 + $0x18] sm:$0xff] }
 0x4a0   : > { %2560 = vmatpush.bf16.msra.mxu1 %v3833_v22  ;;  %v3821_v37 = vor.u32 %v4192_v35, %v3820_v33  ;;  %v4227_v21 = vld [vmem:[%s4743_s21 + $0x70] sm:$0xff]  ;;  %v4244_v22 = vld [vmem:[%s4743_s21 + $0xf8] sm:$0xff]  ;;  %v4233_v35 = vld [vmem:[%s4743_s21 + $0xa0] sm:$0xff] }
 0x4a1   : > { %2312 = vadd.xlane.f32.xlu1 %v4938_v24  ;;  %2582 = vmatpush.bf16.msra.mxu3 %v3905_v1  ;;  %v4190_v1 = vld [vmem:[%s4734_s22 + $0x4c] sm:$0xf]  ;;  %v4224_v33 = vld [vmem:[%s4743_s21 + $0x58] sm:$0xff] }
 0x4a2   : > { %v2299_v25 = vpop.f32.mrf.mxu3  ;;  %2573 = vmatpush.bf16.msra.mxu2 %v3837_v23  ;;  %2548 = vmatpush.bf16.msra.mxu0 %v3813_v31  ;;  %v4218_v23 = vld [vmem:[%s4743_s21 + $0x28] sm:$0xff] }
 0x4a3   : > { %v4194_v25 = vld [vmem:[%s4734_s22 + $0x6c] sm:$0xf] }
 0x4a4   : > { %v3841_v27 = vor.u32 %v4194_v25, %v3838_v26  ;;  %2561 = vmatpush.bf16.msra.mxu1 %v3817_v36  ;;  %v4226_v25 = vld [vmem:[%s4743_s21 + $0x68] sm:$0xff]  ;;  %v4235_v26 = vld [vmem:[%s4743_s21 + $0xb0] sm:$0xff]  ;;  %v4241_v36 = vld [vmem:[%s4743_s21 + $0xe0] sm:$0xff] }
 0x4a5   : > { %2583 = vmatpush.bf16.msra.mxu3 %v3889_v53  ;;  %v3809_v53 = vor.u32 %v4186_v50, %v3806_v51  ;;  %v4242_v31 = vld [vmem:[%s4743_s21 + $0xe8] sm:$0xff] }
 0x4a6   : > { %2574 = vmatpush.bf16.msra.mxu2 %v3821_v37  ;;  %v4215_v37 = vld [vmem:[%s4743_s21 + $0x10] sm:$0xff] }
 0x4a8   : > { %2562 = vmatpush.bf16.msra.mxu1 %v3801_v48  ;;  %v4238_v48 = vld [vmem:[%s4743_s21 + $0xc8] sm:$0xff] }
 0x4a9   : > { %2584 = vmatpush.bf16.msra.mxu3 %v3873_v2 }
 0x4aa   : > { %2575 = vmatpush.bf16.msra.mxu2 %v3805_v49  ;;  %v2373_v49 = vld [vmem:[%s927_s0] sm:$0xf] }
 0x4ab   : > { %v2375_v50 = vperm.slane %v2373_v49, 0  ;;  %v2376_v51 = vperm.slane %v2373_v49, 1  ;;  %v2377_v60 = vperm.slane %v2373_v49, 2  ;;  %v2378_v61 = vperm.slane %v2373_v49, 3 }
 0x4ac   : > { %2563 = vmatpush.bf16.msra.mxu1 %v3785_v58 }
 0x4ad   : > { %2585 = vmatpush.bf16.msra.mxu3 %v3857_v14 }
 0x4ae   : > { %2576 = vmatpush.bf16.msra.mxu2 %v3789_v62 }
 0x4b0   : > { %2908 = vmatpush.bf16.msrb.mxu1 %v4228_v4 }
 0x4b1   : > { %2586 = vmatpush.bf16.msra.mxu3 %v3841_v27  ;;  %v4243_v27 = vld [vmem:[%s4743_s21 + $0xf0] sm:$0xff] }
 0x4b4   : > { %2909 = vmatpush.bf16.msrb.mxu1 %v4227_v21 }
 0x4b8   : > { %2910 = vmatpush.bf16.msrb.mxu1 %v4226_v25 }
 0x4bc   : > { %2911 = vmatpush.bf16.msrb.mxu1 %v4225_v29 }
 0x4c0   : > { %2912 = vmatpush.bf16.msrb.mxu1 %v4224_v33 }
 0x514   : > { %v2313_v38 = vpop.xlane.xlu1 %2312 }
 0x515   : > { %v2314_v39 = vmul.f32 %v2313_v38, %v4780_v34  ;;  %v3822_v38 = vld [vmem:[%s4734_s22 + $0x58] sm:$0xf0] }
 0x517   : > { %v4951_v40 = vsub.f32 %v4938_v24, %v2314_v39  ;;  %v3825_v39 = vor.u32 %v4190_v1, %v3822_v38  ;;  %v4223_v1 = vld [vmem:[%s4743_s21 + $0x50] sm:$0xff]  ;;  %v4232_v38 = vld [vmem:[%s4743_s21 + $0x98] sm:$0xff] }
 0x518   : > { %2913 = vmatpush.bf16.msrb.mxu1 %v4223_v1 }
 0x519   : > { %v2316_v41 = vmul.f32 %v4951_v40, %v4951_v40  ;;  %2587 = vmatpush.bf16.msra.mxu3 %v3825_v39  ;;  %v4240_v39 = vld [vmem:[%s4743_s21 + $0xd8] sm:$0xff] }
 0x51b   : > { %2317 = vadd.xlane.f32.xlu2 %v2316_v41  ;;  %v3796_v41 = vld [vmem:[%s4734_s22 + $0x20] sm:$0xf] }
 0x51c   : > { %v3797_v44 = vor.u32 %v4187_v42, %v3796_v41  ;;  %v4214_v41 = vld [vmem:[%s4743_s21 + $0x8] sm:$0xff] }
 0x51d   : > { %2588 = vmatpush.bf16.msra.mxu3 %v3809_v53  ;;  %v4222_v42 = vld [vmem:[%s4743_s21 + $0x48] sm:$0xff]  ;;  %v4237_v53 = vld [vmem:[%s4743_s21 + $0xc0] sm:$0xff] }
 0x51e   : > { %2549 = vmatpush.bf16.msra.mxu0 %v3797_v44  ;;  %v4239_v44 = vld [vmem:[%s4743_s21 + $0xd0] sm:$0xff]  ;;  %2914 = vmatpush.bf16.msrb.mxu1 %v4222_v42 }
 0x521   : > { %2589 = vmatpush.bf16.msra.mxu3 %v3793_v0 }
 0x522   : > { %2550 = vmatpush.bf16.msra.mxu0 %v3781_v57  ;;  %2915 = vmatpush.bf16.msrb.mxu1 %v4221_v46 }
 0x525   : > { %2934 = vmatpush.bf16.msrb.mxu3 %v4244_v22 }
 0x526   : > { %2895 = vmatpush.bf16.msrb.mxu0 %v4220_v3 }
 0x529   : > { %2935 = vmatpush.bf16.msrb.mxu3 %v4243_v27 }
 0x52a   : > { %2896 = vmatpush.bf16.msrb.mxu0 %v4219_v20 }
 0x52d   : > { %2936 = vmatpush.bf16.msrb.mxu3 %v4242_v31 }
 0x52e   : > { %2897 = vmatpush.bf16.msrb.mxu0 %v4218_v23 }
 0x531   : > { %2937 = vmatpush.bf16.msrb.mxu3 %v4241_v36 }
 0x532   : > { %2898 = vmatpush.bf16.msrb.mxu0 %v4217_v28 }
 0x535   : > { %2938 = vmatpush.bf16.msrb.mxu3 %v4240_v39 }
 0x536   : > { %2899 = vmatpush.bf16.msrb.mxu0 %v4216_v32 }
 0x539   : > { %2939 = vmatpush.bf16.msrb.mxu3 %v4239_v44 }
 0x53a   : > { %2900 = vmatpush.bf16.msrb.mxu0 %v4215_v37 }
 0x53d   : > { %2940 = vmatpush.bf16.msrb.mxu3 %v4238_v48  ;;  %v4342_v48 = vld [vmem:[%s935_s11] ss:$0 sm:$0xff]  ;;  %s5253_s11 = sld [smem:[#allocation37_spill]] (!%p4034_p1) }
 0x53e   : > { %2901 = vmatpush.bf16.msrb.mxu0 %v4214_v41 }
 0x541   : > { %2941 = vmatpush.bf16.msrb.mxu3 %v4237_v53 }
 0x542   : > { %2902 = vmatpush.bf16.msrb.mxu0 %v4213_v45 }
 0x58e   : > { %v2318_v2 = vpop.xlane.xlu2 %2317 }
 0x58f   : > { %v2319_v5 = vmul.f32 %v2318_v2, %v4780_v34 }
 0x591   : > { %v2320_v6 = vadd.f32 1e-05, %v2319_v5 }
 0x593   : > { %4363 = vrsqrt.f32 %v2320_v6  ;;  %vm2327_vm8 = vweird.f32 %v2320_v6 }
 0x599   : > { %v4364_v7 = vpop.eup %4363 }
 0x59a   : > { %v2322_v8 = vmul.f32 %v4364_v7, %v2320_v6  ;;  %vm2328_vm7 = vweird.f32 %v4364_v7 }
 0x59b   : > { %vm2329_vm9 = vmor %vm2327_vm8, %vm2328_vm7 }
 0x59c   : > { %v2323_v9 = vmul.f32 %v4364_v7, %v2322_v8 }
 0x59e   : > { %v2324_v10 = vmul.f32 0.5, %v2323_v9 }
 0x5a0   : > { %v2325_v11 = vsub.f32 1.5, %v2324_v10 }
 0x5a2   : > { %v2326_v12 = vmul.f32 %v4364_v7, %v2325_v11 }
 0x5a4   : > { %v2330_v14 = vsel %vm2329_vm9, %v4364_v7, %v2326_v12 }
 0x5a5   : > { %v2331_v15 = vmul.f32 %v2330_v14, %v4951_v40  ;;  %v4236_v40 = vld [vmem:[%s4743_s21 + $0xb8] sm:$0xff] }
 0x5a6   : > { %2921 = vmatpush.bf16.msrb.mxu2 %v4236_v40 }
 0x5a7   : > { %v2335_v17 = vmul.f32 %v4340_v13, %v2331_v15 }
 0x5a9   : > { %v2339_v18 = vadd.f32 %v4341_v16, %v2335_v17 }
 0x5aa   : > { %2922 = vmatpush.bf16.msrb.mxu2 %v4235_v26 }
 0x5ab   : > { %v2340_v19 = vpack.c.bf16 %v2339_v18, %v2339_v18 }
 0x5ad   : > { %2551 = vmatmul.bf16.vlgmr.msra.gmra.mxu0 %v2340_v19  ;;  %2564 = vmatmul.bf16.vlgmr.msra.gmra.mxu1 %v2340_v19 }
 0x5ae   : > { %2577 = vmatmul.bf16.vlgmr.msra.gmra.mxu2 %v2340_v19  ;;  %2590 = vmatmul.bf16.vlgmr.msra.gmra.mxu3 %v2340_v19 }
 0x5af   : > { %2923 = vmatpush.bf16.msrb.mxu2 %v4234_v30 }
 0x5b3   : > { %2924 = vmatpush.bf16.msrb.mxu2 %v4233_v35 }
 0x5b7   : > { %2925 = vmatpush.bf16.msrb.mxu2 %v4232_v38 }
 0x5bb   : > { %2926 = vmatpush.bf16.msrb.mxu2 %v4231_v43 }
 0x5bf   : > { %2927 = vmatpush.bf16.msrb.mxu2 %v4230_v47 }
 0x5c3   : > { %2928 = vmatpush.bf16.msrb.mxu2 %v4229_v52 }
 0x62a   : > { %v2552_v54 = vpop.f32.mrf.mxu0  ;;  %v2565_v55 = vpop.f32.mrf.mxu1 }
 0x62b   : > { %v2553_v56 = vadd.f32 %v2552_v54, %v2375_v50  ;;  %v2566_v57 = vadd.f32 %v2565_v55, %v2376_v51 }
 0x62d   : > { %v2595_v58 = vmul.f32 %v2553_v56, %v2553_v56  ;;  %v2596_v59 = vmul.f32 %v2566_v57, %v2566_v57 }
 0x62f   : > { %v2599_v62 = vmul.f32 %v2595_v58, %v2553_v56  ;;  %v2600_v63 = vmul.f32 %v2596_v59, %v2566_v57 }
 0x631   : > { %v2603_v0 = vmul.f32 0.044715, %v2599_v62  ;;  %v2604_v2 = vmul.f32 0.044715, %v2600_v63  ;;  %v2578_v3 = vpop.f32.mrf.mxu2  ;;  %v2591_v4 = vpop.f32.mrf.mxu3 }
 0x632   : > { %v2579_v5 = vadd.f32 %v2578_v3, %v2377_v60  ;;  %v2592_v6 = vadd.f32 %v2591_v4, %v2378_v61  ;;  %v2554_v7 = vpop.f32.mrf.mxu0  ;;  %v2567_v8 = vpop.f32.mrf.mxu1 }
 0x633   : > { %v2607_v9 = vadd.f32 %v2603_v0, %v2553_v56  ;;  %v2608_v10 = vadd.f32 %v2604_v2, %v2566_v57 }
 0x634   : > { %v2597_v11 = vmul.f32 %v2579_v5, %v2579_v5  ;;  %v2598_v12 = vmul.f32 %v2592_v6, %v2592_v6 }
 0x635   : > { %v2611_v13 = vmul.f32 0.7978846, %v2607_v9  ;;  %v2612_v14 = vmul.f32 0.7978846, %v2608_v10 }
 0x636   : > { %v2601_v15 = vmul.f32 %v2597_v11, %v2579_v5  ;;  %v2602_v16 = vmul.f32 %v2598_v12, %v2592_v6 }
 0x637   : > { %4365 = vtanh.f32 %v2611_v13 }
 0x638   : > { %4367 = vtanh.f32 %v2612_v14  ;;  %v2605_v17 = vmul.f32 0.044715, %v2601_v15  ;;  %v2606_v18 = vmul.f32 0.044715, %v2602_v16 }
 0x639   : > { %v2580_v19 = vpop.f32.mrf.mxu2  ;;  %v2593_v20 = vpop.f32.mrf.mxu3 }
 0x63a   : > { %v2609_v21 = vadd.f32 %v2605_v17, %v2579_v5  ;;  %v2610_v40 = vadd.f32 %v2606_v18, %v2592_v6 }
 0x63c   : > { %v2613_v22 = vmul.f32 0.7978846, %v2609_v21  ;;  %v2614_v23 = vmul.f32 0.7978846, %v2610_v40 }
 0x63d   : > { %v4366_v25 = vpop.eup %4365 }
 0x63e   : > { %v4368_v26 = vpop.eup %4367  ;;  %4369 = vtanh.f32 %v2613_v22  ;;  %v2619_v27 = vadd.f32 1.0, %v4366_v25 }
 0x63f   : > { %4371 = vtanh.f32 %v2614_v23  ;;  %v2620_v28 = vadd.f32 1.0, %v4368_v26 }
 0x640   : > { %v2623_v29 = vmul.f32 0.5, %v2619_v27 }
 0x641   : > { %v2624_v30 = vmul.f32 0.5, %v2620_v28 }
 0x642   : > { %v2627_v31 = vmul.f32 %v2623_v29, %v2553_v56 }
 0x643   : > { %v2628_v32 = vmul.f32 %v2624_v30, %v2566_v57 }
 0x644   : > { %v4370_v33 = vpop.eup %4369  ;;  %v2631_v35 = vpack.c.bf16 %v2627_v31, %v2627_v31 }
 0x645   : > { %v4372_v36 = vpop.eup %4371  ;;  %v2632_v37 = vpack.c.bf16 %v2628_v32, %v2628_v32  ;;  %v2621_v1 = vadd.f32 1.0, %v4370_v33 }
 0x646   : > { %2903 = vmatmul.bf16.vlgmr.msrb.gmra.mxu0 %v2631_v35  ;;  %v2622_v38 = vadd.f32 1.0, %v4372_v36 }
 0x647   : > { %2916 = vmatmul.bf16.vlgmr.msrb.gmra.mxu1 %v2632_v37  ;;  %v2625_v39 = vmul.f32 0.5, %v2621_v1 }
 0x648   : > { %v2626_v41 = vmul.f32 0.5, %v2622_v38 }
 0x649   : > { %v2629_v42 = vmul.f32 %v2625_v39, %v2579_v5 }
 0x64a   : > { %v2630_v43 = vmul.f32 %v2626_v41, %v2592_v6 }
 0x64b   : > { %v2633_v44 = vpack.c.bf16 %v2629_v42, %v2629_v42 }
 0x64c   : > { %v2634_v45 = vpack.c.bf16 %v2630_v43, %v2630_v43 }
 0x64d   : > { %2929 = vmatmul.bf16.vlgmr.msrb.gmra.mxu2 %v2633_v44 }
 0x64e   : > { %2942 = vmatmul.bf16.vlgmr.msrb.gmra.mxu3 %v2634_v45 }
 0x6c3   : > { %v2904_v46 = vpop.f32.mrf.mxu0 }
 0x6c4   : > { %v2917_v47 = vpop.f32.mrf.mxu1  ;;  %v2905_v49 = vadd.f32 %v4342_v48, %v2904_v46 }
 0x6c6   : > { %v2918_v52 = vadd.f32 %v2917_v47, %v2905_v49 }
 0x6cb   : > { %v2906_v50 = vpop.f32.mrf.mxu0 }
 0x6cc   : > { %v2919_v51 = vpop.f32.mrf.mxu1 }
 0x6d0   : > { %v2930_v53 = vpop.f32.mrf.mxu2 }
 0x6d1   : > { %v2931_v54 = vadd.f32 %v2930_v53, %v2918_v52  ;;  %v2943_v55 = vpop.f32.mrf.mxu3 }
 0x6d3   : > { %v2944_v56 = vadd.f32 %v2943_v55, %v2931_v54 }
 0x6d5   : > { %v2947_v57 = vadd.f32 %v2944_v56, %v4938_v24  ;;  %2952 = sbr.rel (%p4034_p1) target bundleno = 2156 (0x86c), region = 112 }
 0x6d7   : > { %2948 = vst [vmem:[#allocation2] sm:$0xff] %v2947_v57 }
 0x6d8   : > { %v2932_v58 = vpop.f32.mrf.mxu2 }
 0x6d9   : > { %v2945_v59 = vpop.f32.mrf.mxu3 }
 0x6da   : > { %2955 = vadd.xlane.f32.xlu0 %v2947_v57  ;;  %v4252_v0 = vld [vmem:[%s5250_s16 + $0x38] sm:$0xff]  ;;  %v4251_v24 = vld [vmem:[%s5250_s16 + $0x30] sm:$0xff]  ;;  %v4250_v2 = vld [vmem:[%s5250_s16 + $0x28] sm:$0xff] }
 0x6db   : > { %3052 = vmatpush.bf16.msra.mxu0 %v4252_v0  ;;  %v4249_v3 = vld [vmem:[%s5250_s16 + $0x20] sm:$0xff]  ;;  %v4248_v4 = vld [vmem:[%s5250_s16 + $0x18] sm:$0xff]  ;;  %v4247_v5 = vld [vmem:[%s5250_s16 + $0x10] sm:$0xff] }
 0x6dc   : > { %v4246_v6 = vld [vmem:[%s5250_s16 + $0x8] sm:$0xff]  ;;  %v4245_v7 = vld [vmem:[%s5250_s16] sm:$0xff] }
 0x6dd   : > { %v4373_v17 = vld [vmem:[%s5251_s4] ss:$0 sm:$0xff] }
 0x6de   : > { %v4375_v22 = vld [vmem:[%s5253_s11] ss:$0 sm:$0xff] }
 0x6df   : > { %3053 = vmatpush.bf16.msra.mxu0 %v4251_v24 }
 0x6e3   : > { %3054 = vmatpush.bf16.msra.mxu0 %v4250_v2 }
 0x6e7   : > { %3055 = vmatpush.bf16.msra.mxu0 %v4249_v3 }
 0x6eb   : > { %3056 = vmatpush.bf16.msra.mxu0 %v4248_v4 }
 0x6ef   : > { %3057 = vmatpush.bf16.msra.mxu0 %v4247_v5 }
 0x6f3   : > { %3058 = vmatpush.bf16.msra.mxu0 %v4246_v6 }
 0x6f7   : > { %3059 = vmatpush.bf16.msra.mxu0 %v4245_v7 }
 0x74d   : > { %v2956_v60 = vpop.xlane.xlu0 %2955 }
 0x74e   : > { %v2957_v61 = vmul.f32 %v2956_v60, %v4780_v34 }
 0x750   : > { %v2958_v62 = vsub.f32 %v2947_v57, %v2957_v61 }
 0x752   : > { %v2959_v63 = vmul.f32 %v2958_v62, %v2958_v62 }
 0x754   : > { %2960 = vadd.xlane.f32.xlu0 %v2959_v63 }
 0x7c7   : > { %v2961_v8 = vpop.xlane.xlu0 %2960 }
 0x7c8   : > { %v2962_v9 = vmul.f32 %v2961_v8, %v4780_v34  ;;  %v4374_v34 = vld [vmem:[%s5252_s25] ss:$0 sm:$0xff] }
 0x7ca   : > { %v2963_v10 = vadd.f32 1e-05, %v2962_v9 }
 0x7cc   : > { %4376 = vrsqrt.f32 %v2963_v10  ;;  %vm2970_vm11 = vweird.f32 %v2963_v10 }
 0x7d2   : > { %v4377_v11 = vpop.eup %4376 }
 0x7d3   : > { %v2965_v12 = vmul.f32 %v4377_v11, %v2963_v10  ;;  %vm2971_vm10 = vweird.f32 %v4377_v11 }
 0x7d4   : > { %vm2972_vm12 = vmor %vm2970_vm11, %vm2971_vm10 }
 0x7d5   : > { %v2966_v13 = vmul.f32 %v4377_v11, %v2965_v12 }
 0x7d7   : > { %v2967_v14 = vmul.f32 0.5, %v2966_v13 }
 0x7d9   : > { %v2968_v15 = vsub.f32 1.5, %v2967_v14 }
 0x7db   : > { %v2969_v16 = vmul.f32 %v4377_v11, %v2968_v15 }
 0x7dd   : > { %v2973_v18 = vsel %vm2972_vm12, %v4377_v11, %v2969_v16 }
 0x7de   : > { %v2974_v19 = vmul.f32 %v2973_v18, %v2958_v62 }
 0x7e0   : > { %v2978_v20 = vmul.f32 %v4373_v17, %v2974_v19 }
 0x7e2   : > { %v2982_v21 = vadd.f32 %v4374_v34, %v2978_v20 }
 0x7e4   : > { %v2983_v40 = vpack.c.bf16 %v2982_v21, %v2982_v21 }
 0x7e6   : > { %3060 = vmatmul.bf16.vlgmr.msra.gmra.mxu0 %v2983_v40 }
 0x863   : > { %v3061_v23 = vpop.f32.mrf.mxu0 }
 0x864   : > { %v3062_v25 = vadd.f32 %v4375_v22, %v3061_v23 }
 0x866   : > { %3065 = vst [vmem:[%s867_s7] sm:$0xff] %v3062_v25 }
 0x86b   : > { %v3063_v26 = vpop.f32.mrf.mxu0 }
 0x86c PF: > { %s5254_s2 = sld [smem:[#allocation10_spill]]  ;;  %s3079_s3 = sshll.u32 %s867_s7, 4  ;;  %s3080_s3 = int_to_ptr.vmem [resolvable:$true] %s3079_s3 }
 0x86d   : > { %s5255_s18 = sld [smem:[#allocation7_spill]] }
 0x86e   : > { %s5257_s26 = sld [smem:[#allocation38_spill]] }
 0x872   : > { %s4068_s29 = sshll.u32 %s5254_s2, 3 }
 0x873   : > { %s5259_s22 = sand.u32 1, %s5255_s18  }
 0x874   : > { %s5258_s30 = smov %s5257_s26  ;;  %s3077_s27 = scalar_lea.hbm %s5257_s26, %s4068_s29 }
 0x875   : > { %s3081_s24 = sshll.u32 %s3077_s27, 4  ;;  %s3067_s20 = scalar_lea.sflag [#allocation4], %s5259_s22  ;;  %s3082_s24 = int_to_ptr.hbm [resolvable:$true] %s3081_s24 }
 0x876   : > { %s4392_s23 = sshra.s32 %s3082_s24, 4  ;;  %s4398_s4 = scalar_lea.hbm %s5258_s30, 16  ;;  %s4393_s23 = int_to_ptr.hbm [resolvable:$true] %s4392_s23 }
 0x877   : > { %s4394_s6 = scalar_lea.hbm %s4393_s23, 8  ;;  %p4399_p6 = scmp.lt.s32.totalorder %s4393_s23, %s5258_s30 }
 0x878   : > { %p4395_p2 = scmp.ne.s32.totalorder %s4393_s23, %s4394_s6  ;;  %p4400_p7 = scmp.lt.s32.totalorder %s4398_s4, %s4394_s6 }
 0x87a   : > { %p4396_p4 = pnand %p4395_p2, %p4634_p3  ;;  %p4401_p8 = por %p4400_p7, %p4399_p6 }
 0x87c   : > { %p4397_p5 = pneg %p4396_p4 }
 0x87e   : > { %p4402_p10 = pnand %p4401_p8, %p4397_p5 }
 0x880   : > { %4405 = shalt.err (!%p4402_p10)
}
 0x881   : > { %4253 = dma.vmem_to_hbm [thread:$0]  (%p4634_p3), %s3080_s3, 128, %s3082_s24, %s3067_s20  }
 0x882 PF: > { %s5260_s28 = sld [smem:[#allocation13_spill]] }
 0x883   : > { %s5261_s7 = sld [smem:[#allocation6_spill]] }
 0x888   : > { %p4259_p11 = scmp.ge.s32.totalorder %s5260_s28, 2 }
 0x889   : > { %s3093_s0 = sand.u32 1, %s5261_s7  }
 0x88a   : > { %p4256_p12 = pnand %p4259_p11, %p4644_p9  ;;  %s3094_s9 = scalar_lea.sflag [#allocation4], %s3093_s0 }
 0x88c   : > { %p4257_p13 = pneg %p4256_p12 }
 0x88e   : > { %4439 = dma.done.wait (%p4257_p13), %s3094_s9, 128  }
 0x88f   : > { %4441 = vsyncadd (%p4257_p13), %s3094_s9, 4294967168  ;;  %s34_s0 = sadd.s32 1, %s5260_s28   ;;  %s5263_s2 = sld [smem:[#allocation7_spill]] }
 0x890   : > { %p31_p0 = scmp.ge.s32.totalorder %s34_s0, 6   ;;  %s5264_s25 = sld [smem:[#allocation8_spill]] }
 0x891   : > { %s5265_s26 = sld [smem:[#allocation18_spill]] }
 0x892   : > { %s5266_s27 = sld [smem:[#allocation11_spill]]  ;;  %33 = sbr.rel (!%p31_p0) target bundleno = 24 (0x18), region = 195 }
 0x893   : > { %s5267_s3 = sld [smem:[#allocation12_spill]] }
 0x894   : > { %s5268_s28 = sld [smem:[#allocation14_spill]] }
 0x895   : > { %s5269_s29 = sld [smem:[#allocation16_spill]] }
 0x897   :  { %3100 = vsyncpa [#allocation4], 1 }
 0x898   :  { %3102 = vsyncpa [#allocation4 + $0x1], 1 }

</bundles_post_ra>
